<compile_context>
chip_gen: v5e
topology: v5e:2x2
jax: 0.10.0
libtpu: 0.0.40
codegen_flags: <defaults>
</compile_context>

<pallas_src>
import functools

import jax
import jax.numpy as jnp
from jax.experimental import pallas as pl
from jax.experimental.pallas import tpu as pltpu

LN_EPS = 1e-5  # PyTorch nn.LayerNorm default


def _attn_pool_kernel(x_ref, ws_ref, wv_ref, bv_ref, o_ref, *, tb, n, c):
    mxu = wv_ref.dtype  # dtype fed to the MXU; accumulation is always f32.

    # --- LayerNorm over channels (lane axis); affine folded into ws/wv/bv ---
    x = x_ref[...].astype(jnp.float32)                       # (tb, n, c)
    mean = jnp.mean(x, axis=-1, keepdims=True)
    xc = x - mean
    var = jnp.mean(xc * xc, axis=-1, keepdims=True)
    xhat = xc * jax.lax.rsqrt(var + LN_EPS)                   # (tb, n, c)

    # --- scores with q folded into the k projection (VPU mul + lane reduce);
    #     the constant bias terms are softmax-invariant and already dropped ---
    s = jnp.sum(xhat * ws_ref[...], axis=-1, keepdims=True)   # (tb, n, 1)
    s = s - jnp.max(s, axis=1, keepdims=True)                 # softmax over tokens
    p = jnp.exp(s)
    p = p * pl.reciprocal(jnp.sum(p, axis=1, keepdims=True), approx=True)

    # --- v projection: one MXU pass with M = tb*n (LN affine already folded) ---
    v = (jnp.dot(xhat.reshape(tb * n, c).astype(mxu), wv_ref[...],
                 preferred_element_type=jnp.float32)
         + bv_ref[...]).reshape(tb, n, c)                     # (tb, n, c) f32

    # --- weighted token sum on VPU/XLU (no M=1 MXU launches); lane-dense store ---
    o_ref[...] = jnp.sum(p * v, axis=1).astype(o_ref.dtype)   # (tb, c)


def attention_pool2d(x_nchw, cls_q, params, *, tb=16, mxu_dtype=None):
    """Pallas implementation of AttentionPool2d.forward(x, cls_q).

    x_nchw : (B, C, H, W) conv output (NCHW).  LN runs in f32 on this dtype.
    cls_q  : (1, 1, C) learned query token.
    tb     : batch tile; M = tb*N rows per MXU pass.  Keep B/tb >= 2 on v7x so
             the parallel grid axis can use both TensorCores.
    mxu_dtype : dtype fed to the MXU / the v-projection weight DMA (e.g.
             jnp.bfloat16 — beneficial on v5e/v6e/v7x).  None -> x dtype.
    returns: (B, C) in x_nchw.dtype
    """
    B, C, H, W = x_nchw.shape
    N = H * W
    out_dtype = x_nchw.dtype
    if mxu_dtype is None:
        mxu_dtype = x_nchw.dtype
    f32 = jnp.float32

    # Tokens-major layout so C sits on the lane axis inside the kernel (tiny
    # wrapper pass; avoids lane-sparse vregs + a per-step XLU transpose).
    x = jnp.transpose(x_nchw.reshape(B, C, N), (0, 2, 1))              # (B, N, C)

    gamma = params["gamma"].astype(f32).reshape(1, C)
    beta = params["beta"].astype(f32).reshape(1, C)
    Wk = params["wvk"][:C].astype(f32)          # k = xn @ Wk^T + bk  (bk dropped)
    Wv = params["wvk"][C:].astype(f32)
    bv = params["bvk"][C:].astype(f32)

    # Hoisted, batch-invariant q projection folded into the score weight:
    #   s = q·(xn @ Wk^T + bk) = xhat @ (gamma ⊙ (q @ Wk)) + softmax-invariant const
    q_row = (cls_q.reshape(1, C).astype(f32) @ params["wq"].astype(f32).T
             + params["bq"].astype(f32).reshape(1, C))                 # (1, C)
    ws = ((q_row @ Wk) * gamma).astype(f32)                            # (1, C)

    # v projection with the LayerNorm affine folded in:
    #   v = xhat @ (gamma ⊙ Wv^T) + (beta @ Wv^T + bv)
    wv_t = (gamma.reshape(C, 1) * Wv.T).astype(mxu_dtype)              # (C, C)
    bv_row = (beta @ Wv.T + bv.reshape(1, C)).astype(f32)              # (1, C)

    # Pad batch to a multiple of the batch tile (padded rows are discarded).
    tb = max(1, min(tb, B))
    pad = (-B) % tb
    if pad:
        x = jnp.concatenate([x, jnp.zeros((pad, N, C), x.dtype)], axis=0)
    Bp = B + pad

    kernel = functools.partial(_attn_pool_kernel, tb=tb, n=N, c=C)
    fixed = lambda b: (0, 0)

    pooled = pl.pallas_call(
        kernel,
        out_shape=jax.ShapeDtypeStruct((Bp, C), jnp.float32),
        grid=(Bp // tb,),
        in_specs=[
            pl.BlockSpec((tb, N, C), lambda b: (b, 0, 0)),  # x, tokens-major
            pl.BlockSpec((1, C), fixed),                    # folded score weight
            pl.BlockSpec((C, C), fixed),                    # folded v weight
            pl.BlockSpec((1, C), fixed),                    # folded v bias
        ],
        out_specs=pl.BlockSpec((tb, C), lambda b: (b, 0)),  # lane-dense pooled slab
        compiler_params=pltpu.CompilerParams(
            dimension_semantics=("parallel",),
            vmem_limit_bytes=32 * 1024 * 1024,  # fits v5e/v6e/v7x scoped budgets
        ),
    )(x, ws, wv_t, bv_row)[:B]

    # Output projection hoisted: one (B, C) x (C, C) matmul instead of a
    # near-idle M=tb MXU op per grid step.
    out = pooled @ params["wp"].astype(f32).T + params["bp"].astype(f32).reshape(1, C)
    return out.astype(out_dtype)


def _reference(x_nchw, cls_q, p):
    """Pure-JAX mirror of the PyTorch forward, for correctness checking."""
    B, C, H, W = x_nchw.shape
    x = jnp.transpose(x_nchw.reshape(B, C, -1), (0, 2, 1))            # (B, N, C)
    mean = x.mean(-1, keepdims=True)
    var = ((x - mean) ** 2).mean(-1, keepdims=True)
    xn = (x - mean) / jnp.sqrt(var + LN_EPS) * p["gamma"] + p["beta"]
    q = jnp.broadcast_to(cls_q, (B, 1, C)) @ p["wq"].T + p["bq"]      # (B, 1, C)
    kv = xn @ p["wvk"].T + p["bvk"]                                   # (B, N, 2C)
    k, v = kv[..., :C], kv[..., C:]
    attn = jax.nn.softmax(q @ jnp.swapaxes(k, -1, -2), axis=-1)       # (B, 1, N)
    out = (attn @ v).reshape(B, C)
    return out @ p["wp"].T + p["bp"]


if __name__ == "__main__":
    key = jax.random.PRNGKey(0)
    # dim = 128 (lane-dense), N = H*W = 16, B = 32 -> two grid steps of tb = 16
    # (M = tb*N = 256 per MXU pass; two steps so v7x's two TCs both get work).
    B, C, H, W = 32, 128, 4, 4
    ks = jax.random.split(key, 8)

    x = jax.random.normal(ks[0], (B, C, H, W), jnp.float32)
    cls_q = jax.random.normal(ks[1], (1, 1, C), jnp.float32) * 0.02

    params = dict(
        gamma=jnp.ones((C,), jnp.float32),        # LayerNorm weight init
        beta=jnp.zeros((C,), jnp.float32),        # LayerNorm bias init
        wq=jax.random.normal(ks[2], (C, C), jnp.float32) * 0.02,
        bq=jax.random.normal(ks[3], (C,), jnp.float32) * 0.02,
        wvk=jax.random.normal(ks[4], (2 * C, C), jnp.float32) * 0.02,
        bvk=jax.random.normal(ks[5], (2 * C,), jnp.float32) * 0.02,
        wp=jax.random.normal(ks[6], (C, C), jnp.float32) * 0.02,
        bp=jax.random.normal(ks[7], (C,), jnp.float32) * 0.02,
    )

    ref = _reference(x, cls_q, params)

    # f32 MXU feed: faithful to the PyTorch module's numerics.
    out = attention_pool2d(x, cls_q, params)
    jax.block_until_ready(out)
    assert out.shape == (B, C)
    assert jnp.allclose(out, ref, atol=3e-4, rtol=1e-3), "f32 kernel mismatch vs reference"

    # bf16 MXU feed (beneficial on v5e/v6e/v7x); LN/softmax/accumulation stay f32.
    out_bf16 = attention_pool2d(x, cls_q, params, mxu_dtype=jnp.bfloat16)
    jax.block_until_ready(out_bf16)
    assert out_bf16.shape == (B, C)
    assert jnp.allclose(out_bf16, ref, atol=5e-3, rtol=5e-2), "bf16 kernel mismatch vs reference"

    print("KERNEL_OK")
</pallas_src>

<mosaic_0001>
module attributes {stable_mosaic.version = 11 : i64} {
  func.func @_attn_pool_kernel(%arg0: i32, %arg1: memref<16x16x128xf32, #tpu.memory_space<vmem>>, %arg2: memref<1x128xf32, #tpu.memory_space<vmem>>, %arg3: memref<128x128xf32, #tpu.memory_space<vmem>>, %arg4: memref<1x128xf32, #tpu.memory_space<vmem>>, %arg5: memref<16x128xf32, #tpu.memory_space<vmem>>) attributes {dimension_semantics = [#tpu.dimension_semantics<parallel>], iteration_bounds = array<i64: 2>, scalar_prefetch = 0 : i64, scratch_operands = 0 : i64, tpu.core_type = #tpu.core_type<tc>, window_params = [{transform_indices = @transform_0, window_bounds = array<i64: 16, 16, 128>}, {pipeline_mode = #tpu.pipeline_mode<synchronous>, transform_indices = @transform_1, window_bounds = array<i64: 1, 128>}, {pipeline_mode = #tpu.pipeline_mode<synchronous>, transform_indices = @transform_2, window_bounds = array<i64: 128, 128>}, {pipeline_mode = #tpu.pipeline_mode<synchronous>, transform_indices = @transform_3, window_bounds = array<i64: 1, 128>}, {transform_indices = @transform_4, window_bounds = array<i64: 16, 128>}]} {
    %c0 = arith.constant 0 : index
    %c0_0 = arith.constant 0 : index
    %c0_1 = arith.constant 0 : index
    %0 = vector.load %arg1[%c0, %c0_0, %c0_1] : memref<16x16x128xf32, #tpu.memory_space<vmem>>, vector<16x16x128xf32>
    %cst = arith.constant dense<0.000000e+00> : vector<16x16xf32>
    %1 = vector.multi_reduction <add>, %0, %cst [2] : vector<16x16x128xf32> to vector<16x16xf32>
    %2 = vector.shape_cast %1 : vector<16x16xf32> to vector<16x16x1xf32>
    %cst_2 = arith.constant 1.280000e+02 : f32
    %3 = vector.broadcast %cst_2 : f32 to vector<16x16x1xf32>
    %4 = arith.divf %2, %3 : vector<16x16x1xf32>
    %5 = vector.broadcast %4 : vector<16x16x1xf32> to vector<16x16x128xf32>
    %6 = arith.subf %0, %5 : vector<16x16x128xf32>
    %7 = arith.mulf %6, %6 : vector<16x16x128xf32>
    %cst_3 = arith.constant dense<0.000000e+00> : vector<16x16xf32>
    %8 = vector.multi_reduction <add>, %7, %cst_3 [2] : vector<16x16x128xf32> to vector<16x16xf32>
    %9 = vector.shape_cast %8 : vector<16x16xf32> to vector<16x16x1xf32>
    %cst_4 = arith.constant 1.280000e+02 : f32
    %10 = vector.broadcast %cst_4 : f32 to vector<16x16x1xf32>
    %11 = arith.divf %9, %10 : vector<16x16x1xf32>
    %cst_5 = arith.constant 9.99999974E-6 : f32
    %12 = vector.broadcast %cst_5 : f32 to vector<16x16x1xf32>
    %13 = arith.addf %11, %12 : vector<16x16x1xf32>
    %14 = math.rsqrt %13 : vector<16x16x1xf32>
    %15 = vector.broadcast %14 : vector<16x16x1xf32> to vector<16x16x128xf32>
    %16 = arith.mulf %6, %15 : vector<16x16x128xf32>
    %c0_6 = arith.constant 0 : index
    %c0_7 = arith.constant 0 : index
    %17 = vector.load %arg2[%c0_6, %c0_7] : memref<1x128xf32, #tpu.memory_space<vmem>>, vector<1x128xf32>
    %18 = vector.shape_cast %17 : vector<1x128xf32> to vector<1x1x128xf32>
    %19 = vector.broadcast %18 : vector<1x1x128xf32> to vector<16x16x128xf32>
    %20 = arith.mulf %16, %19 : vector<16x16x128xf32>
    %cst_8 = arith.constant dense<0.000000e+00> : vector<16x16xf32>
    %21 = vector.multi_reduction <add>, %20, %cst_8 [2] : vector<16x16x128xf32> to vector<16x16xf32>
    %22 = vector.shape_cast %21 : vector<16x16xf32> to vector<16x16x1xf32>
    %cst_9 = arith.constant dense<0xFF800000> : vector<16x1xf32>
    %23 = vector.multi_reduction <maximumf>, %22, %cst_9 [1] : vector<16x16x1xf32> to vector<16x1xf32>
    %24 = vector.shape_cast %23 : vector<16x1xf32> to vector<16x1x1xf32>
    %25 = vector.broadcast %24 : vector<16x1x1xf32> to vector<16x16x1xf32>
    %26 = arith.subf %22, %25 : vector<16x16x1xf32>
    %27 = math.exp %26 : vector<16x16x1xf32>
    %cst_10 = arith.constant dense<0.000000e+00> : vector<16x1xf32>
    %28 = vector.multi_reduction <add>, %27, %cst_10 [1] : vector<16x16x1xf32> to vector<16x1xf32>
    %29 = vector.shape_cast %28 : vector<16x1xf32> to vector<16x1x1xf32>
    %30 = tpu.reciprocal %29 {approx = true} : vector<16x1x1xf32> -> vector<16x1x1xf32>
    %31 = vector.broadcast %30 : vector<16x1x1xf32> to vector<16x16x1xf32>
    %32 = arith.mulf %27, %31 : vector<16x16x1xf32>
    %33 = vector.shape_cast %16 : vector<16x16x128xf32> to vector<256x128xf32>
    %c0_11 = arith.constant 0 : index
    %c0_12 = arith.constant 0 : index
    %34 = vector.load %arg3[%c0_11, %c0_12] : memref<128x128xf32, #tpu.memory_space<vmem>>, vector<128x128xf32>
    %cst_13 = arith.constant dense<0.000000e+00> : vector<256x128xf32>
    %35 = tpu.matmul %33, %34, %cst_13 {dimension_numbers = #tpu.dot_dimension_numbers<[1], [0], [0], [1], [0, 0, 1, 1], [], []>} : vector<256x128xf32>, vector<128x128xf32>, vector<256x128xf32> -> vector<256x128xf32>
    %c0_14 = arith.constant 0 : index
    %c0_15 = arith.constant 0 : index
    %36 = vector.load %arg4[%c0_14, %c0_15] : memref<1x128xf32, #tpu.memory_space<vmem>>, vector<1x128xf32>
    %37 = vector.broadcast %36 : vector<1x128xf32> to vector<256x128xf32>
    %38 = arith.addf %35, %37 : vector<256x128xf32>
    %39 = vector.shape_cast %38 : vector<256x128xf32> to vector<16x16x128xf32>
    %40 = vector.broadcast %32 : vector<16x16x1xf32> to vector<16x16x128xf32>
    %41 = arith.mulf %40, %39 : vector<16x16x128xf32>
    %cst_16 = arith.constant dense<0.000000e+00> : vector<16x128xf32>
    %42 = vector.multi_reduction <add>, %41, %cst_16 [1] : vector<16x16x128xf32> to vector<16x128xf32>
    %c0_17 = arith.constant 0 : index
    %c0_18 = arith.constant 0 : index
    %43 = vector.load %arg5[%c0_17, %c0_18] : memref<16x128xf32, #tpu.memory_space<vmem>>, vector<16x128xf32>
    tpu.vector_store %arg5[%c0_17, %c0_18], %42 {strides = array<i32>} : memref<16x128xf32, #tpu.memory_space<vmem>>, vector<16x128xf32>,
    return
  }
  func.func @transform_0(%arg0: i32) -> (i32, i32, i32) {
    %c0_i32 = arith.constant 0 : i32
    %c0_i32_0 = arith.constant 0 : i32
    %c0_i32_1 = arith.constant 0 : i32
    return %arg0, %c0_i32, %c0_i32_0 : i32, i32, i32
  }
  func.func @transform_1(%arg0: i32) -> (i32, i32) {
    %c0_i32 = arith.constant 0 : i32
    %c0_i32_0 = arith.constant 0 : i32
    %c0_i32_1 = arith.constant 0 : i32
    return %c0_i32, %c0_i32_0 : i32, i32
  }
  func.func @transform_2(%arg0: i32) -> (i32, i32) {
    %c0_i32 = arith.constant 0 : i32
    %c0_i32_0 = arith.constant 0 : i32
    %c0_i32_1 = arith.constant 0 : i32
    return %c0_i32, %c0_i32_0 : i32, i32
  }
  func.func @transform_3(%arg0: i32) -> (i32, i32) {
    %c0_i32 = arith.constant 0 : i32
    %c0_i32_0 = arith.constant 0 : i32
    %c0_i32_1 = arith.constant 0 : i32
    return %c0_i32, %c0_i32_0 : i32, i32
  }
  func.func @transform_4(%arg0: i32) -> (i32, i32) {
    %c0_i32 = arith.constant 0 : i32
    %c0_i32_0 = arith.constant 0 : i32
    return %arg0, %c0_i32 : i32, i32
  }
}

</mosaic_0001>

<bundles_post_ra>
// kernel: tpu_custom_call.1
= control target key start
LH: loop header
LB: loop body
LE: loop exit
PB: predicated region body
PF: predicated region fallthrough
CT: control target
= control target key end

     0   :  { %s3720_s0 = inlined_call_operand.hbm [shape: f32[32,16,128], index: 0, kind: input, shape index: {}]   ;;  %s3721_s1 = inlined_call_operand.hbm [shape: f32[1,128], index: 1, kind: input, shape index: {}]   ;;  %s3722_s2 = inlined_call_operand.hbm [shape: f32[128,128], index: 2, kind: input, shape index: {}]   ;;  %s3723_s3 = inlined_call_operand.vmem [shape: f32[1,128], index: 3, kind: input, shape index: {}]   ;;  %s3724_s4 = inlined_call_operand.hbm [shape: f32[32,128], index: 4, kind: output, shape index: {}]  }
   0x1   :  { %3725 = sst [smem:[#allocation13_spill]] %s3721_s1 }
   0x2   :  { %3726 = sst [smem:[#allocation14_spill]] %s3722_s2 }
   0x3   :  { %9 = vsyncpa [#allocation3], 0 }
   0x4   :  { %11 = vsyncpa [#allocation3 + $0x1], 0 }
   0x5   :  { %12 = vsyncpa [#allocation6], 0 }
   0x6   :  { %13 = vsyncpa [#allocation4], 0 }
   0x7   :  { %15 = vsyncpa [#allocation4 + $0x1], 0  ;;  %s2327_s15 = smov 0   ;;  %s2329_s16 = smov 0  }
   0x8   :  { %s2331_s17 = smov 0   ;;  %s2333_s18 = smov 0  }
   0x9 LB: > { %s2348_s19 = sadd.s32 4294967295, %s2293_s18   ;;  %s1825_s20 = sadd.s32 4294967294, %s2293_s18   ;;  %s2293_s18 = sphi %s2333_s18, %s3757_s18   ;;  %s2289_s17 = sphi %s2331_s17, %s3756_s17   ;;  %s2285_s16 = sphi %s2329_s16, %s3755_s16   ;;  %s2281_s15 = sphi %s2327_s15, %s3754_s15  }
   0xa   : > { %s2352_s21 = sadd.s32 1, %s2293_s18   ;;  %s28_s22 = sadd.s32 1, %s2289_s17 }
   0xb   : > { %s25_s23 = ssub.s32 %s2293_s18, %s2352_s21  ;;  %p35_p0 = scmp.ne.s32.totalorder %s2289_s17, %s2285_s16 }
   0xc   : > { %p26_p1 = scmp.eq.s32.totalorder %s25_s23, 0  ;;  %p36_p2 = scmp.eq.s32.totalorder %s2293_s18, 0 }
   0xd   : > { %p41_p3 = scmp.ne.s32.totalorder %s2285_s16, %s2281_s15  ;;  %p42_p4 = scmp.eq.s32.totalorder %s2348_s19, 0 }
   0xe   : > { %s2364_s24 = scalar_select %p26_p1, %s2289_s17, %s28_s22  }
   0xf   : > { %p2366_p5 = por %p36_p2, %p35_p0  ;;  %p2372_p6 = por %p42_p4, %p41_p3 }
  0x10   : > { %3727 = sst [smem:[#allocation12_spill]] %s2364_s24  ;;  %p128_p7 = scmp.eq.s32.totalorder %s2348_s19, 1 }
  0x11   : > { %p134_p8 = scmp.eq.s32.totalorder %s1825_s20, 1  ;;  %p1826_p9 = scmp.ge.s32.totalorder %s2293_s18, 1 }
  0x12   : > { %p141_p10 = scmp.lt.s32.totalorder %s2293_s18, 3  ;;  %p2379_p11 = por %p128_p7, %p35_p0 }
  0x13   : > { %p2383_p12 = por %p134_p8, %p41_p3  ;;  %s3733_s1 = sld [smem:[#allocation13_spill]] }
  0x14   : > { %p2387_p13 = pnand %p1826_p9, %p141_p10  ;;  %s2295_s7 = smov [#allocation5]  }
  0x15   : > { %s155_s8 = sshll.u32 %s2295_s7, 4  ;;  %p1924_p3 = scmp.lt.s32.totalorder %s2293_s18, 2  ;;  %s156_s8 = int_to_ptr.vmem [resolvable:$true] %s155_s8 }
  0x16   : > { %p1907_p1 = pneg %p2387_p13  ;;  %s3734_s2 = sld [smem:[#allocation14_spill]] }
  0x17   : > { %p2405_p7 = pnand %p1924_p3, %p2366_p5  ;;  %s2296_s13 = smov [#allocation7]  }
  0x18   : > { %p1908_p2 = pnand %p1907_p1, %p42_p4  ;;  %s166_s14 = sshll.u32 %s2296_s13, 4  ;;  %s167_s14 = int_to_ptr.vmem [resolvable:$true] %s166_s14 }
  0x19   : > { %s153_s6 = sshll.u32 %s3733_s1, 4  ;;  %s183_s20 = sand.u32 1, %s2289_s17   ;;  %s154_s6 = int_to_ptr.hbm [resolvable:$true] %s153_s6 }
  0x1a   : > { %1910 = dma.hbm_to_vmem [thread:$0]  (!%p1908_p2), %s154_s6, 16, %s156_s8, [#allocation6]  }
  0x1b   : > { %s2297_s22 = smov 128   ;;  %s2298_s23 = smov 8  }
  0x1c   : > { %s164_s11 = sshll.u32 %s3734_s2, 4  ;;  %s1830_s30 = sshll.u32 %s183_s20, 8  ;;  %s165_s11 = int_to_ptr.hbm [resolvable:$true] %s164_s11 }
  0x1d   : > { %1913 = dma.hbm_to_vmem [thread:$0]  (!%p1908_p2), %s165_s11, 2048, %s167_s14, [#allocation6], %s2297_s22, %s2297_s22, %s2298_s23  }
  0x1e   : > { %s1845_s5 = sshll.u32 %s2293_s18, 8  ;;  %s187_s6 = scalar_lea.vmem [#allocation2], %s1830_s30 }
  0x1f   : > { %s193_s10 = scalar_lea.hbm %s3720_s0, %s1845_s5  ;;  %s196_s25 = sshll.u32 %s187_s6, 4  ;;  %s197_s25 = int_to_ptr.vmem [resolvable:$true] %s196_s25 }
  0x20   : > { %s194_s8 = sshll.u32 %s193_s10, 4  ;;  %s184_s1 = scalar_lea.sflag [#allocation3], %s183_s20  ;;  %s195_s8 = int_to_ptr.hbm [resolvable:$true] %s194_s8 }
  0x21   : > { %s2193_s2 = sshra.s32 %s195_s8, 4  ;;  %p2197_p8 = pneg %p2405_p7  ;;  %s2194_s2 = int_to_ptr.hbm [resolvable:$true] %s2193_s2 }
  0x22   : > { %s2195_s13 = scalar_lea.hbm %s2194_s2, 256  ;;  %s2200_s24 = scalar_lea.hbm %s3720_s0, 512 }
  0x23   : > { %p2196_p5 = scmp.ne.s32.totalorder %s2194_s2, %s2195_s13  ;;  %p2201_p1 = scmp.lt.s32.totalorder %s2194_s2, %s3720_s0 }
  0x24   : > { %p2202_p2 = scmp.lt.s32.totalorder %s2200_s24, %s2195_s13 }
  0x25   : > { %p2198_p9 = pnand %p2197_p8, %p2196_p5 }
  0x26   : > { %p2203_p3 = por %p2202_p2, %p2201_p1 }
  0x27   : > { %p2199_p10 = pneg %p2198_p9 }
  0x29   : > { %p2204_p0 = pnand %p2203_p3, %p2199_p10 }
  0x2b   : > { %2207 = shalt.err (!%p2204_p0)
}
  0x2c   : > { %1917 = dma.hbm_to_vmem [thread:$0]  (!%p2405_p7), %s195_s8, 4096, %s197_s25, %s184_s1, %s2297_s22, %s2297_s22, %s2298_s23  }
  0x2d   : > { %208 = sbr.rel (%p2387_p13) target bundleno = 670 (0x29e), region = 36  ;;  %s2427_s20 = sand.u32 (!%p2387_p13), 1, %s2285_s16  }
  0x2e   : > { %s1835_s30 = sshll.u32 (!%p2387_p13), %s2427_s20, 8  ;;  %s211_s9 = scalar_lea.sflag (!%p2387_p13), [#allocation3], %s2427_s20 }
  0x2f   : > { %s2431_s10 = scalar_lea.vmem (!%p2387_p13), [#allocation2], %s1835_s30 }
  0x32   : > { %2268 = dma.done.wait (%p2372_p6), %s211_s9, 4096  }
  0x33   : > { %2270 = vsyncadd (%p2372_p6), %s211_s9, 4294963200 }
  0x34   : > { %2272 = dma.done.wait (%p42_p4), [#allocation6], 2064  }
  0x35   : > { %2274 = vsyncadd (%p42_p4), [#allocation6], 4294965232  ;;  %v2442_v0 = vld [vmem:[%s2431_s10 + $0x80] sm:$0xff]  ;;  %v2457_v4 = vld [vmem:[%s2431_s10 + $0xc8] sm:$0xff]  ;;  %v2299_v32 = vmov 128.0   ;;  %s1838_s29 = sshll.u32 %s2427_s20, 4 }
  0x36   : > { %v2445_v1 = vld [vmem:[%s2431_s10 + $0x40] sm:$0xff]  ;;  %316 = vadd.xlane.f32.xlu0 %v2442_v0  ;;  %v2460_v5 = vld [vmem:[%s2431_s10 + $0x88] sm:$0xff]  ;;  %v2472_v8 = vld [vmem:[%s2431_s10 + $0x90] sm:$0xff]  ;;  %1969 = vrcp.f32 %v2299_v32  ;;  %s1846_s12 = sshll.u32 %s2348_s19, 4  ;;  %s249_s22 = scalar_lea.vmem [#allocation8], %s1838_s29 }
  0x37   : > { %v2448_v2 = vld [vmem:[%s2431_s10] sm:$0xff]  ;;  %300 = vadd.xlane.f32.xlu2 %v2445_v1  ;;  %v2466_v6 = vld [vmem:[%s2431_s10 + $0x48] sm:$0xff]  ;;  %v2478_v9 = vld [vmem:[%s2431_s10 + $0x98] sm:$0xff]  ;;  %s1729_s25 = scalar_lea.hbm %s3724_s4, %s1846_s12  ;;  %s1730_s19 = sshll.u32 %s249_s22, 4  ;;  %s1731_s19 = int_to_ptr.vmem [resolvable:$true] %s1730_s19 }
  0x38   : > { %284 = vadd.xlane.f32.xlu1 %v2448_v2  ;;  %v2454_v3 = vld [vmem:[%s2431_s10 + $0xc0] sm:$0xff]  ;;  %v2469_v7 = vld [vmem:[%s2431_s10 + $0x8] sm:$0xff]  ;;  %v2481_v10 = vld [vmem:[%s2431_s10 + $0xd0] sm:$0xff]  ;;  %s1732_s8 = sshll.u32 %s1729_s25, 4  ;;  %s1718_s13 = scalar_lea.sflag [#allocation4], %s2427_s20  ;;  %s1733_s8 = int_to_ptr.hbm [resolvable:$true] %s1732_s8 }
  0x39   : > { %v2484_v11 = vld [vmem:[%s2431_s10 + $0x10] sm:$0xff]  ;;  %v2490_v12 = vld [vmem:[%s2431_s10 + $0x18] sm:$0xff]  ;;  %v2502_v15 = vld [vmem:[%s2431_s10 + $0xe0] sm:$0xff]  ;;  %s2237_s11 = sshra.s32 %s1733_s8, 4  ;;  %s2243_s30 = scalar_lea.hbm %s3724_s4, 32  ;;  %s2238_s11 = int_to_ptr.hbm [resolvable:$true] %s2237_s11 }
  0x3a   : > { %v2493_v13 = vld [vmem:[%s2431_s10 + $0x50] sm:$0xff]  ;;  %v2496_v14 = vld [vmem:[%s2431_s10 + $0xd8] sm:$0xff]  ;;  %v2505_v16 = vld [vmem:[%s2431_s10 + $0xa0] sm:$0xff]  ;;  %s2239_s14 = scalar_lea.hbm %s2238_s11, 16  ;;  %p2244_p0 = scmp.lt.s32.totalorder %s2238_s11, %s3724_s4 }
  0x3b   : > { %v2508_v17 = vld [vmem:[%s2431_s10 + $0x58] sm:$0xff]  ;;  %v2514_v18 = vld [vmem:[%s2431_s10 + $0x60] sm:$0xff]  ;;  %v2520_v20 = vld [vmem:[%s2431_s10 + $0xa8] sm:$0xff]  ;;  %p2240_p4 = scmp.ne.s32.totalorder %s2238_s11, %s2239_s14  ;;  %p2245_p7 = scmp.lt.s32.totalorder %s2243_s30, %s2239_s14 }
  0x3c   : > { %v2517_v19 = vld [vmem:[%s2431_s10 + $0x20] sm:$0xff]  ;;  %v2526_v21 = vld [vmem:[%s2431_s10 + $0xe8] sm:$0xff]  ;;  %v2529_v22 = vld [vmem:[%s2431_s10 + $0x30] sm:$0xff]  ;;  %v1970_v33 = vpop.eup %1969 }
  0x3d   : > { %v2532_v23 = vld [vmem:[%s2431_s10 + $0x28] sm:$0xff]  ;;  %v2538_v24 = vld [vmem:[%s2431_s10 + $0xb0] sm:$0xff]  ;;  %v2541_v25 = vld [vmem:[%s2431_s10 + $0xf8] sm:$0xff]  ;;  %v349_v34 = vmul.f32 128.0, %v1970_v33  ;;  %vm353_vm0 = vweird.f32 %v1970_v33  ;;  %p2241_p6 = pnand %p2240_p4, %p2379_p11  ;;  %p2246_p5 = por %p2245_p7, %p2244_p0 }
  0x3e   : > { %332 = vadd.xlane.f32.xlu0 %v2454_v3  ;;  %v2544_v26 = vld [vmem:[%s2431_s10 + $0x68] sm:$0xff]  ;;  %v2550_v27 = vld [vmem:[%s2431_s10 + $0xf0] sm:$0xff]  ;;  %v2553_v28 = vld [vmem:[%s2431_s10 + $0xb8] sm:$0xff] }
  0x3f   : > { %334 = vadd.xlane.f32.xlu2 %v2457_v4  ;;  %v2558_v29 = vld [vmem:[%s2431_s10 + $0x70] sm:$0xff]  ;;  %v2561_v30 = vld [vmem:[%s2431_s10 + $0x38] sm:$0xff]  ;;  %v350_v35 = vsub.f32 1.0, %v349_v34  ;;  %p2242_p13 = pneg %p2241_p6 }
  0x40   : > { %318 = vadd.xlane.f32.xlu1 %v2460_v5  ;;  %v2566_v31 = vld [vmem:[%s2431_s10 + $0x78] sm:$0xff] }
  0x41   : > { %v351_v36 = vmul.f32 %v1970_v33, %v350_v35  ;;  %p2247_p8 = pnand %p2246_p5, %p2242_p13 }
  0x43   : > { %v352_v37 = vadd.f32 %v1970_v33, %v351_v36 }
  0x45   : > { %v2569_v38 = vsel %vm353_vm0, %v1970_v33, %v352_v37 }
  0x46   : > { %286 = vadd.xlane.f32.xlu0 %v2469_v7 }
  0x47   : > { %302 = vadd.xlane.f32.xlu2 %v2466_v6 }
  0x48   : > { %320 = vadd.xlane.f32.xlu1 %v2472_v8 }
  0x4e   : > { %336 = vadd.xlane.f32.xlu0 %v2481_v10 }
  0x4f   : > { %322 = vadd.xlane.f32.xlu2 %v2478_v9 }
  0x50   : > { %288 = vadd.xlane.f32.xlu1 %v2484_v11 }
  0x56   : > { %304 = vadd.xlane.f32.xlu0 %v2493_v13 }
  0x57   : > { %290 = vadd.xlane.f32.xlu2 %v2490_v12 }
  0x58   : > { %338 = vadd.xlane.f32.xlu1 %v2496_v14 }
  0x5e   : > { %324 = vadd.xlane.f32.xlu0 %v2505_v16 }
  0x5f   : > { %340 = vadd.xlane.f32.xlu2 %v2502_v15 }
  0x60   : > { %306 = vadd.xlane.f32.xlu1 %v2508_v17 }
  0x66   : > { %292 = vadd.xlane.f32.xlu0 %v2517_v19 }
  0x67   : > { %308 = vadd.xlane.f32.xlu2 %v2514_v18 }
  0x68   : > { %326 = vadd.xlane.f32.xlu1 %v2520_v20 }
  0x6e   : > { %342 = vadd.xlane.f32.xlu0 %v2526_v21 }
  0x6f   : > { %296 = vadd.xlane.f32.xlu2 %v2529_v22 }
  0x70   : > { %294 = vadd.xlane.f32.xlu1 %v2532_v23 }
  0x76   : > { %328 = vadd.xlane.f32.xlu0 %v2538_v24 }
  0x77   : > { %346 = vadd.xlane.f32.xlu2 %v2541_v25 }
  0x78   : > { %310 = vadd.xlane.f32.xlu1 %v2544_v26 }
  0x7e   : > { %344 = vadd.xlane.f32.xlu0 %v2550_v27 }
  0x80   : > { %330 = vadd.xlane.f32.xlu1 %v2553_v28 }
  0x86   : > { %312 = vadd.xlane.f32.xlu0 %v2558_v29 }
  0x88   : > { %298 = vadd.xlane.f32.xlu1 %v2561_v30 }
  0x90   : > { %314 = vadd.xlane.f32.xlu1 %v2566_v31 }
  0xa9   : > { %v317_v39 = vpop.xlane.xlu0 %316 }
  0xaa   : > { %v301_v40 = vpop.xlane.xlu2 %300  ;;  %v371_v41 = vmul.f32 %v2569_v38, %v317_v39 }
  0xab   : > { %v285_v42 = vpop.xlane.xlu1 %284  ;;  %v363_v54 = vmul.f32 %v2569_v38, %v301_v40 }
  0xac   : > { %v355_v43 = vmul.f32 %v2569_v38, %v285_v42  ;;  %v2574_v44 = vsub.f32 %v2442_v0, %v371_v41 }
  0xad   : > { %v2603_v61 = vsub.f32 %v2445_v1, %v363_v54 }
  0xae   : > { %v2577_v45 = vsub.f32 %v2448_v2, %v355_v43  ;;  %v435_v46 = vmul.f32 %v2574_v44, %v2574_v44 }
  0xb0   : > { %v419_v47 = vmul.f32 %v2577_v45, %v2577_v45  ;;  %483 = vadd.xlane.f32.xlu2 %v435_v46 }
  0xb1   : > { %v333_v48 = vpop.xlane.xlu0 %332 }
  0xb2   : > { %451 = vadd.xlane.f32.xlu1 %v419_v47  ;;  %v335_v49 = vpop.xlane.xlu2 %334  ;;  %v379_v50 = vmul.f32 %v2569_v38, %v333_v48 }
  0xb3   : > { %v380_v51 = vmul.f32 %v2569_v38, %v335_v49  ;;  %v319_v52 = vpop.xlane.xlu1 %318 }
  0xb4   : > { %v372_v53 = vmul.f32 %v2569_v38, %v319_v52  ;;  %v2588_v55 = vsub.f32 %v2454_v3, %v379_v50 }
  0xb5   : > { %v2591_v56 = vsub.f32 %v2457_v4, %v380_v51 }
  0xb6   : > { %v2594_v57 = vsub.f32 %v2460_v5, %v372_v53  ;;  %v443_v58 = vmul.f32 %v2588_v55, %v2588_v55  ;;  %v427_v5 = vmul.f32 %v2603_v61, %v2603_v61 }
  0xb7   : > { %v444_v59 = vmul.f32 %v2591_v56, %v2591_v56 }
  0xb8   : > { %v436_v60 = vmul.f32 %v2594_v57, %v2594_v57  ;;  %499 = vadd.xlane.f32.xlu2 %v443_v58 }
  0xb9   : > { %v287_v63 = vpop.xlane.xlu0 %286 }
  0xba   : > { %501 = vadd.xlane.f32.xlu1 %v444_v59  ;;  %485 = vadd.xlane.f32.xlu0 %v436_v60  ;;  %v303_v62 = vpop.xlane.xlu2 %302  ;;  %v356_v0 = vmul.f32 %v2569_v38, %v287_v63 }
  0xbb   : > { %v321_v2 = vpop.xlane.xlu1 %320  ;;  %v364_v32 = vmul.f32 %v2569_v38, %v303_v62 }
  0xbc   : > { %v2607_v3 = vsub.f32 %v2469_v7, %v356_v0  ;;  %v373_v4 = vmul.f32 %v2569_v38, %v321_v2 }
  0xbd   : > { %v2619_v34 = vsub.f32 %v2466_v6, %v364_v32 }
  0xbe   : > { %v420_v1 = vmul.f32 %v2607_v3, %v2607_v3  ;;  %v2616_v33 = vsub.f32 %v2472_v8, %v373_v4 }
  0xbf   : > { %v428_v6 = vmul.f32 %v2619_v34, %v2619_v34 }
  0xc0   : > { %467 = vadd.xlane.f32.xlu2 %v427_v5  ;;  %v437_v41 = vmul.f32 %v2616_v33, %v2616_v33 }
  0xc1   : > { %v337_v35 = vpop.xlane.xlu0 %336 }
  0xc2   : > { %453 = vadd.xlane.f32.xlu0 %v420_v1  ;;  %v323_v7 = vpop.xlane.xlu2 %322  ;;  %v381_v40 = vmul.f32 %v2569_v38, %v337_v35 }
  0xc3   : > { %v374_v36 = vmul.f32 %v2569_v38, %v323_v7  ;;  %v289_v37 = vpop.xlane.xlu1 %288 }
  0xc4   : > { %v357_v8 = vmul.f32 %v2569_v38, %v289_v37  ;;  %v2634_v43 = vsub.f32 %v2481_v10, %v381_v40 }
  0xc5   : > { %v2623_v39 = vsub.f32 %v2478_v9, %v374_v36 }
  0xc6   : > { %v2637_v9 = vsub.f32 %v2484_v11, %v357_v8  ;;  %v445_v10 = vmul.f32 %v2634_v43, %v2634_v43 }
  0xc7   : > { %v438_v42 = vmul.f32 %v2623_v39, %v2623_v39 }
  0xc8   : > { %487 = vadd.xlane.f32.xlu2 %v437_v41  ;;  %v421_v11 = vmul.f32 %v2637_v9, %v2637_v9 }
  0xc9   : > { %489 = vadd.xlane.f32.xlu1 %v438_v42  ;;  %v305_v47 = vpop.xlane.xlu0 %304 }
  0xca   : > { %469 = vadd.xlane.f32.xlu0 %v428_v6  ;;  %v291_v46 = vpop.xlane.xlu2 %290  ;;  %v365_v51 = vmul.f32 %v2569_v38, %v305_v47 }
  0xcb   : > { %v358_v48 = vmul.f32 %v2569_v38, %v291_v46  ;;  %v339_v49 = vpop.xlane.xlu1 %338 }
  0xcc   : > { %v382_v52 = vmul.f32 %v2569_v38, %v339_v49  ;;  %v2652_v54 = vsub.f32 %v2493_v13, %v365_v51 }
  0xcd   : > { %v2641_v50 = vsub.f32 %v2490_v12, %v358_v48 }
  0xce   : > { %v2655_v12 = vsub.f32 %v2496_v14, %v382_v52  ;;  %v429_v13 = vmul.f32 %v2652_v54, %v2652_v54  ;;  %v1414_v52 = vld [vmem:[#allocation7 + $0x78] sm:$0xff] }
  0xcf   : > { %v422_v53 = vmul.f32 %v2641_v50, %v2641_v50  ;;  %1419 = vmatpush.msra.mxu0 %v1414_v52  ;;  %1848 = vmatpush.msra.mxu2 %v1414_v52 }
  0xd0   : > { %503 = vadd.xlane.f32.xlu2 %v445_v10  ;;  %v446_v14 = vmul.f32 %v2655_v12, %v2655_v12  ;;  %1849 = vmatpush.msra.mxu3 %v1414_v52 }
  0xd1   : > { %457 = vadd.xlane.f32.xlu1 %v422_v53  ;;  %v325_v59 = vpop.xlane.xlu0 %324  ;;  %1847 = vmatpush.msra.mxu1 %v1414_v52 }
  0xd2   : > { %455 = vadd.xlane.f32.xlu0 %v421_v11  ;;  %v341_v58 = vpop.xlane.xlu2 %340  ;;  %v375_v0 = vmul.f32 %v2569_v38, %v325_v59  ;;  %v1413_v11 = vld [vmem:[#allocation7 + $0x70] sm:$0xff] }
  0xd3   : > { %v383_v60 = vmul.f32 %v2569_v38, %v341_v58  ;;  %v307_v62 = vpop.xlane.xlu1 %306  ;;  %1420 = vmatpush.msra.mxu0 %v1413_v11  ;;  %1851 = vmatpush.msra.mxu2 %v1413_v11 }
  0xd4   : > { %v366_v2 = vmul.f32 %v2569_v38, %v307_v62  ;;  %v2670_v5 = vsub.f32 %v2505_v16, %v375_v0  ;;  %1852 = vmatpush.msra.mxu3 %v1413_v11  ;;  %1850 = vmatpush.msra.mxu1 %v1413_v11  ;;  %v1410_v11 = vld [vmem:[#allocation7 + $0x58] sm:$0xff] }
  0xd5   : > { %v2659_v63 = vsub.f32 %v2502_v15, %v383_v60  ;;  %v1412_v60 = vld [vmem:[#allocation7 + $0x68] sm:$0xff] }
  0xd6   : > { %v2673_v15 = vsub.f32 %v2508_v17, %v366_v2  ;;  %v439_v16 = vmul.f32 %v2670_v5, %v2670_v5  ;;  %1421 = vmatpush.msra.mxu0 %v1412_v60  ;;  %1854 = vmatpush.msra.mxu2 %v1412_v60  ;;  %v1411_v2 = vld [vmem:[#allocation7 + $0x60] sm:$0xff] }
  0xd7   : > { %v447_v4 = vmul.f32 %v2659_v63, %v2659_v63  ;;  %1855 = vmatpush.msra.mxu3 %v1412_v60  ;;  %1853 = vmatpush.msra.mxu1 %v1412_v60  ;;  %v1405_v60 = vld [vmem:[#allocation7 + $0x30] sm:$0xff] }
  0xd8   : > { %471 = vadd.xlane.f32.xlu2 %v429_v13  ;;  %v430_v17 = vmul.f32 %v2673_v15, %v2673_v15  ;;  %1422 = vmatpush.msra.mxu0 %v1411_v2 }
  0xd9   : > { %507 = vadd.xlane.f32.xlu1 %v447_v4  ;;  %v293_v1 = vpop.xlane.xlu0 %292  ;;  %1857 = vmatpush.msra.mxu2 %v1411_v2 }
  0xda   : > { %505 = vadd.xlane.f32.xlu0 %v446_v14  ;;  %v309_v32 = vpop.xlane.xlu2 %308  ;;  %v359_v37 = vmul.f32 %v2569_v38, %v293_v1  ;;  %1858 = vmatpush.msra.mxu3 %v1411_v2 }
  0xdb   : > { %v367_v7 = vmul.f32 %v2569_v38, %v309_v32  ;;  %v327_v35 = vpop.xlane.xlu1 %326  ;;  %1856 = vmatpush.msra.mxu1 %v1411_v2  ;;  %1423 = vmatpush.msra.mxu0 %v1410_v11  ;;  %v1400_v2 = vld [vmem:[#allocation7 + $0x8] sm:$0xff] }
  0xdc   : > { %v376_v40 = vmul.f32 %v2569_v38, %v327_v35  ;;  %v2688_v8 = vsub.f32 %v2517_v19, %v359_v37  ;;  %1860 = vmatpush.msra.mxu2 %v1410_v11  ;;  %1861 = vmatpush.msra.mxu3 %v1410_v11 }
  0xdd   : > { %v2677_v36 = vsub.f32 %v2514_v18, %v367_v7  ;;  %1859 = vmatpush.msra.mxu1 %v1410_v11 }
  0xde   : > { %v2691_v18 = vsub.f32 %v2520_v20, %v376_v40  ;;  %v423_v47 = vmul.f32 %v2688_v8, %v2688_v8 }
  0xdf   : > { %v431_v41 = vmul.f32 %v2677_v36, %v2677_v36 }
  0xe0   : > { %491 = vadd.xlane.f32.xlu2 %v439_v16  ;;  %v440_v49 = vmul.f32 %v2691_v18, %v2691_v18 }
  0xe1   : > { %475 = vadd.xlane.f32.xlu1 %v431_v41  ;;  %v343_v6 = vpop.xlane.xlu0 %342 }
  0xe2   : > { %473 = vadd.xlane.f32.xlu0 %v430_v17  ;;  %v384_v46 = vmul.f32 %v2569_v38, %v343_v6  ;;  %v297_v19 = vpop.xlane.xlu2 %296 }
  0xe3   : > { %v295_v42 = vpop.xlane.xlu1 %294  ;;  %v361_v59 = vmul.f32 %v2569_v38, %v297_v19 }
  0xe4   : > { %v360_v48 = vmul.f32 %v2569_v38, %v295_v42  ;;  %v2700_v51 = vsub.f32 %v2526_v21, %v384_v46 }
  0xe6   : > { %v2703_v20 = vsub.f32 %v2532_v23, %v360_v48  ;;  %v448_v62 = vmul.f32 %v2700_v51, %v2700_v51 }
  0xe8   : > { %459 = vadd.xlane.f32.xlu2 %v423_v47  ;;  %v424_v0 = vmul.f32 %v2703_v20, %v2703_v20 }
  0xe9   : > { %v329_v10 = vpop.xlane.xlu0 %328 }
  0xea   : > { %493 = vadd.xlane.f32.xlu0 %v440_v49  ;;  %v377_v53 = vmul.f32 %v2569_v38, %v329_v10  ;;  %v347_v32 = vpop.xlane.xlu2 %346 }
  0xeb   : > { %v311_v58 = vpop.xlane.xlu1 %310  ;;  %v386_v16 = vmul.f32 %v2569_v38, %v347_v32 }
  0xec   : > { %v2708_v21 = vsub.f32 %v2538_v24, %v377_v53  ;;  %v368_v23 = vmul.f32 %v2569_v38, %v311_v58  ;;  %v2718_v24 = vsub.f32 %v2529_v22, %v361_v59  ;;  %v1408_v58 = vld [vmem:[#allocation7 + $0x48] sm:$0xff]  ;;  %v1407_v59 = vld [vmem:[#allocation7 + $0x40] sm:$0xff] }
  0xed   : > { %v2739_v41 = vsub.f32 %v2541_v25, %v386_v16 }
  0xee   : > { %v441_v13 = vmul.f32 %v2708_v21, %v2708_v21  ;;  %v2721_v14 = vsub.f32 %v2544_v26, %v368_v23  ;;  %v425_v22 = vmul.f32 %v2718_v24, %v2718_v24  ;;  %v1404_v23 = vld [vmem:[#allocation7 + $0x28] sm:$0xff] }
  0xef   : > { %v450_v48 = vmul.f32 %v2739_v41, %v2739_v41 }
  0xf0   : > { %495 = vadd.xlane.f32.xlu1 %v441_v13  ;;  %509 = vadd.xlane.f32.xlu2 %v448_v62  ;;  %v432_v37 = vmul.f32 %v2721_v14, %v2721_v14  ;;  %v1403_v62 = vld [vmem:[#allocation7 + $0x20] sm:$0xff]  ;;  %v1401_v13 = vld [vmem:[#allocation7 + $0x10] sm:$0xff] }
  0xf1   : > { %v345_v4 = vpop.xlane.xlu0 %344 }
  0xf2   : > { %461 = vadd.xlane.f32.xlu0 %v424_v0  ;;  %v385_v1 = vmul.f32 %v2569_v38, %v345_v4  ;;  %v1402_v0 = vld [vmem:[#allocation7 + $0x18] sm:$0xff]  ;;  %v1399_v4 = vld [vmem:[#allocation7] sm:$0xff] }
  0xf3   : > { %v331_v7 = vpop.xlane.xlu1 %330 }
  0xf4   : > { %v2727_v35 = vsub.f32 %v2550_v27, %v385_v1  ;;  %v378_v26 = vmul.f32 %v2569_v38, %v331_v7 }
  0xf6   : > { %v449_v40 = vmul.f32 %v2727_v35, %v2727_v35  ;;  %v2736_v17 = vsub.f32 %v2553_v28, %v378_v26 }
  0xf8   : > { %463 = vadd.xlane.f32.xlu1 %v425_v22  ;;  %477 = vadd.xlane.f32.xlu2 %v432_v37  ;;  %v442_v28 = vmul.f32 %v2736_v17, %v2736_v17 }
  0xf9   : > { %v313_v27 = vpop.xlane.xlu0 %312 }
  0xfa   : > { %511 = vadd.xlane.f32.xlu0 %v449_v40  ;;  %v369_v6 = vmul.f32 %v2569_v38, %v313_v27 }
  0xfb   : > { %v299_v42 = vpop.xlane.xlu1 %298 }
  0xfc   : > { %v2743_v46 = vsub.f32 %v2558_v29, %v369_v6  ;;  %v362_v47 = vmul.f32 %v2569_v38, %v299_v42 }
  0xfe   : > { %v433_v25 = vmul.f32 %v2743_v46, %v2743_v46  ;;  %v2753_v49 = vsub.f32 %v2561_v30, %v362_v47  ;;  %v1409_v30 = vld [vmem:[#allocation7 + $0x50] sm:$0xff] }
  0xff   : > { %1424 = vmatpush.msra.mxu0 %v1409_v30  ;;  %1863 = vmatpush.msra.mxu2 %v1409_v30 }
 0x100   : > { %513 = vadd.xlane.f32.xlu1 %v450_v48  ;;  %497 = vadd.xlane.f32.xlu2 %v442_v28  ;;  %v426_v10 = vmul.f32 %v2753_v49, %v2753_v49 }
 0x101   : > { %1425 = vmatpush.msra.mxu0 %v1408_v58  ;;  %1864 = vmatpush.msra.mxu3 %v1409_v30 }
 0x102   : > { %479 = vadd.xlane.f32.xlu0 %v433_v25  ;;  %1866 = vmatpush.msra.mxu2 %v1408_v58 }
 0x103   : > { %v315_v19 = vpop.xlane.xlu1 %314  ;;  %1862 = vmatpush.msra.mxu1 %v1409_v30  ;;  %1426 = vmatpush.msra.mxu0 %v1407_v59 }
 0x104   : > { %v370_v29 = vmul.f32 %v2569_v38, %v315_v19  ;;  %1867 = vmatpush.msra.mxu3 %v1408_v58  ;;  %1869 = vmatpush.msra.mxu2 %v1407_v59 }
 0x105   : > { %1865 = vmatpush.msra.mxu1 %v1408_v58 }
 0x106   : > { %v2759_v52 = vsub.f32 %v2566_v31, %v370_v29  ;;  %v1406_v31 = vld [vmem:[#allocation7 + $0x38] sm:$0xff]  ;;  %1870 = vmatpush.msra.mxu3 %v1407_v59 }
 0x107   : > { %1427 = vmatpush.msra.mxu0 %v1406_v31  ;;  %1872 = vmatpush.msra.mxu2 %v1406_v31 }
 0x108   : > { %v434_v53 = vmul.f32 %v2759_v52, %v2759_v52  ;;  %465 = vadd.xlane.f32.xlu2 %v426_v10  ;;  %1873 = vmatpush.msra.mxu3 %v1406_v31 }
 0x109   : > { %1868 = vmatpush.msra.mxu1 %v1407_v59  ;;  %1428 = vmatpush.msra.mxu0 %v1405_v60 }
 0x10a   : > { %481 = vadd.xlane.f32.xlu0 %v434_v53  ;;  %1875 = vmatpush.msra.mxu2 %v1405_v60 }
 0x10b   : > { %1876 = vmatpush.msra.mxu3 %v1405_v60  ;;  %1871 = vmatpush.msra.mxu1 %v1406_v31 }
 0x10c   : > { %1429 = vmatpush.msra.mxu0 %v1404_v23  ;;  %1878 = vmatpush.msra.mxu2 %v1404_v23 }
 0x10d   : > { %1879 = vmatpush.msra.mxu3 %v1404_v23  ;;  %1874 = vmatpush.msra.mxu1 %v1405_v60 }
 0x10e   : > { %1430 = vmatpush.msra.mxu0 %v1403_v62  ;;  %1881 = vmatpush.msra.mxu2 %v1403_v62 }
 0x10f   : > { %1882 = vmatpush.msra.mxu3 %v1403_v62  ;;  %1877 = vmatpush.msra.mxu1 %v1404_v23 }
 0x110   : > { %1431 = vmatpush.msra.mxu0 %v1402_v0  ;;  %1884 = vmatpush.msra.mxu2 %v1402_v0 }
 0x111   : > { %1885 = vmatpush.msra.mxu3 %v1402_v0  ;;  %1880 = vmatpush.msra.mxu1 %v1403_v62 }
 0x112   : > { %1432 = vmatpush.msra.mxu0 %v1401_v13  ;;  %1887 = vmatpush.msra.mxu2 %v1401_v13 }
 0x113   : > { %1888 = vmatpush.msra.mxu3 %v1401_v13  ;;  %1883 = vmatpush.msra.mxu1 %v1402_v0 }
 0x114   : > { %1433 = vmatpush.msra.mxu0 %v1400_v2  ;;  %1890 = vmatpush.msra.mxu2 %v1400_v2 }
 0x115   : > { %1891 = vmatpush.msra.mxu3 %v1400_v2  ;;  %1886 = vmatpush.msra.mxu1 %v1401_v13 }
 0x116   : > { %1434 = vmatpush.msra.mxu0 %v1399_v4  ;;  %1893 = vmatpush.msra.mxu2 %v1399_v4 }
 0x117   : > { %1894 = vmatpush.msra.mxu3 %v1399_v4  ;;  %1889 = vmatpush.msra.mxu1 %v1400_v2 }
 0x119   : > { %1892 = vmatpush.msra.mxu1 %v1399_v4 }
 0x123   : > { %v484_v32 = vpop.xlane.xlu2 %483 }
 0x124   : > { %v531_v1 = vmul.f32 %v484_v32, %v2569_v38 }
 0x125   : > { %v452_v7 = vpop.xlane.xlu1 %451 }
 0x126   : > { %v515_v22 = vmul.f32 %v452_v7, %v2569_v38  ;;  %v563_v26 = vadd.f32 1e-05, %v531_v1 }
 0x128   : > { %v547_v37 = vadd.f32 1e-05, %v515_v22  ;;  %1971 = vrsqrt.f32 %v563_v26  ;;  %vm745_vm4 = vweird.f32 %v563_v26 }
 0x12a   : > { %1973 = vrsqrt.f32 %v547_v37  ;;  %vm585_vm2 = vweird.f32 %v547_v37 }
 0x12b   : > { %v500_v16 = vpop.xlane.xlu2 %499 }
 0x12c   : > { %v539_v40 = vmul.f32 %v500_v16, %v2569_v38 }
 0x12d   : > { %v486_v27 = vpop.xlane.xlu0 %485  ;;  %v502_v6 = vpop.xlane.xlu1 %501 }
 0x12e   : > { %v532_v42 = vmul.f32 %v486_v27, %v2569_v38  ;;  %v540_v47 = vmul.f32 %v502_v6, %v2569_v38  ;;  %v1972_v48 = vpop.eup %1971  ;;  %v2768_v28 = vadd.f32 1e-05, %v539_v40 }
 0x12f   : > { %v740_v19 = vmul.f32 %v1972_v48, %v563_v26  ;;  %vm746_vm1 = vweird.f32 %v1972_v48 }
 0x130   : > { %v1974_v25 = vpop.eup %1973  ;;  %v2770_v29 = vadd.f32 1e-05, %v532_v42  ;;  %v2772_v10 = vadd.f32 1e-05, %v540_v47  ;;  %1975 = vrsqrt.f32 %v2768_v28  ;;  %vm747_vm5 = vmor %vm745_vm4, %vm746_vm1  ;;  %v2800_v42 = vld [vmem:[#allocation5] ss:$0 sm:$0xff]  ;;  %vm825_vm10 = vweird.f32 %v2768_v28 }
 0x131   : > { %v580_v11 = vmul.f32 %v1974_v25, %v547_v37  ;;  %v741_v53 = vmul.f32 %v1972_v48, %v740_v19  ;;  %vm586_vm3 = vweird.f32 %v1974_v25 }
 0x132   : > { %1977 = vrsqrt.f32 %v2770_v29  ;;  %vm587_vm6 = vmor %vm585_vm2, %vm586_vm3  ;;  %vm755_vm7 = vweird.f32 %v2770_v29  ;;  %vm835_vm11 = vweird.f32 %v2772_v10 }
 0x133   : > { %v581_v30 = vmul.f32 %v1974_v25, %v580_v11  ;;  %1979 = vrsqrt.f32 %v2772_v10  ;;  %v742_v58 = vmul.f32 0.5, %v741_v53  ;;  %v468_v59 = vpop.xlane.xlu2 %467 }
 0x134   : > { %v523_v60 = vmul.f32 %v468_v59, %v2569_v38 }
 0x135   : > { %v582_v31 = vmul.f32 0.5, %v581_v30  ;;  %v454_v23 = vpop.xlane.xlu0 %453  ;;  %v743_v62 = vsub.f32 1.5, %v742_v58 }
 0x136   : > { %v516_v0 = vmul.f32 %v454_v23, %v2569_v38  ;;  %v2779_v13 = vpop.eup %1975  ;;  %v2781_v4 = vadd.f32 1e-05, %v523_v60 }
 0x137   : > { %v583_v2 = vsub.f32 1.5, %v582_v31  ;;  %v820_v1 = vmul.f32 %v2779_v13, %v2768_v28  ;;  %v744_v22 = vmul.f32 %v1972_v48, %v743_v62  ;;  %vm826_vm8 = vweird.f32 %v2779_v13 }
 0x138   : > { %v2783_v32 = vpop.eup %1977  ;;  %v2787_v7 = vadd.f32 1e-05, %v516_v0  ;;  %1981 = vrsqrt.f32 %v2781_v4  ;;  %vm827_vm12 = vmor %vm825_vm10, %vm826_vm8  ;;  %vm665_vm15 = vweird.f32 %v2781_v4 }
 0x139   : > { %v2789_v16 = vpop.eup %1979  ;;  %v750_v40 = vmul.f32 %v2783_v32, %v2770_v29  ;;  %v584_v27 = vmul.f32 %v1974_v25, %v583_v2  ;;  %v821_v6 = vmul.f32 %v2779_v13, %v820_v1  ;;  %v748_v11 = vsel %vm747_vm5, %v1972_v48, %v744_v22 }
 0x13a   : > { %v830_v26 = vmul.f32 %v2789_v16, %v2772_v10  ;;  %1983 = vrsqrt.f32 %v2787_v7  ;;  %v2806_v60 = vmul.f32 %v748_v11, %v2574_v44  ;;  %vm756_vm9 = vweird.f32 %v2783_v32 }
 0x13b   : > { %v751_v47 = vmul.f32 %v2783_v32, %v750_v40  ;;  %v588_v19 = vsel %vm587_vm6, %v1974_v25, %v584_v27  ;;  %v822_v53 = vmul.f32 0.5, %v821_v6  ;;  %v488_v58 = vpop.xlane.xlu2 %487  ;;  %vm757_vm13 = vmor %vm755_vm7, %vm756_vm9  ;;  %vm836_vm14 = vweird.f32 %v2789_v16 }
 0x13c   : > { %v831_v30 = vmul.f32 %v2789_v16, %v830_v26  ;;  %v490_v59 = vpop.xlane.xlu1 %489  ;;  %v899_v31 = vmul.f32 %v588_v19, %v2577_v45  ;;  %v533_v62 = vmul.f32 %v488_v58, %v2569_v38  ;;  %1483 = vmatmul.f32.vlgmr.msra.gmra.mxu2 %v2806_v60  ;;  %vm2862_vm0 = vmor %vm835_vm11, %vm836_vm14  ;;  %vm595_vm2 = vweird.f32 %v2787_v7 }
 0x13d   : > { %v752_v23 = vmul.f32 0.5, %v751_v47  ;;  %v470_v37 = vpop.xlane.xlu0 %469  ;;  %v534_v0 = vmul.f32 %v490_v59, %v2569_v38  ;;  %v823_v25 = vsub.f32 1.5, %v822_v53 }
 0x13e   : > { %v832_v48 = vmul.f32 0.5, %v831_v30  ;;  %v524_v2 = vmul.f32 %v470_v37, %v2569_v38  ;;  %1435 = vmatmul.f32.vlgmr.msra.gmra.mxu0 %v899_v31  ;;  %v935_v45 = vmul.f32 %v2800_v42, %v899_v31  ;;  %v2814_v1 = vpop.eup %1981  ;;  %v2816_v22 = vadd.f32 1e-05, %v533_v62 }
 0x13f   : > { %v753_v44 = vsub.f32 1.5, %v752_v23  ;;  %v2818_v40 = vadd.f32 1e-05, %v534_v0  ;;  %v660_v6 = vmul.f32 %v2814_v1, %v2781_v4  ;;  %v824_v47 = vmul.f32 %v2779_v13, %v823_v25 }
 0x140   : > { %v2821_v27 = vpop.eup %1983  ;;  %v2825_v26 = vadd.f32 1e-05, %v524_v2  ;;  %967 = vadd.xlane.f32.xlu1 %v935_v45  ;;  %1985 = vrsqrt.f32 %v2816_v22  ;;  %v833_v11 = vsub.f32 1.5, %v832_v48  ;;  %vm666_vm1 = vweird.f32 %v2814_v1 }
 0x141   : > { %v590_v19 = vmul.f32 %v2821_v27, %v2787_v7  ;;  %v661_v53 = vmul.f32 %v2814_v1, %v660_v6  ;;  %v754_v30 = vmul.f32 %v2783_v32, %v753_v44  ;;  %v828_v28 = vsel %vm827_vm12, %v2779_v13, %v824_v47  ;;  %vm667_vm4 = vmor %vm665_vm15, %vm666_vm1 }
 0x142   : > { %1987 = vrsqrt.f32 %v2825_v26  ;;  %v2847_v62 = vmul.f32 %v828_v28, %v2588_v55  ;;  %vm596_vm3 = vweird.f32 %v2821_v27  ;;  %vm675_vm6 = vweird.f32 %v2825_v26 }
 0x143   : > { %v591_v58 = vmul.f32 %v2821_v27, %v590_v19  ;;  %1989 = vrsqrt.f32 %v2818_v40  ;;  %v662_v59 = vmul.f32 0.5, %v661_v53  ;;  %v504_v31 = vpop.xlane.xlu2 %503  ;;  %v758_v37 = vsel %vm757_vm13, %v2783_v32, %v754_v30  ;;  %vm597_vm5 = vmor %vm595_vm2, %vm596_vm3 }
 0x144   : > { %v458_v23 = vpop.xlane.xlu1 %457  ;;  %v541_v25 = vmul.f32 %v504_v31, %v2569_v38  ;;  %v2852_v29 = vmul.f32 %v758_v37, %v2594_v57  ;;  %1507 = vmatmul.f32.vlgmr.msra.gmra.mxu3 %v2847_v62  ;;  %v834_v32 = vmul.f32 %v2789_v16, %v833_v11  ;;  %vm765_vm9 = vweird.f32 %v2816_v22 }
 0x145   : > { %v592_v0 = vmul.f32 0.5, %v591_v58  ;;  %v456_v48 = vpop.xlane.xlu0 %455  ;;  %v518_v2 = vmul.f32 %v458_v23, %v2569_v38  ;;  %v663_v13 = vsub.f32 1.5, %v662_v59  ;;  %vm775_vm11 = vweird.f32 %v2818_v40 }
 0x146   : > { %v517_v45 = vmul.f32 %v456_v48, %v2569_v38  ;;  %v2866_v44 = vpop.eup %1985  ;;  %v2868_v6 = vadd.f32 1e-05, %v541_v25  ;;  %1486 = vmatmul.f32.gmra.mxu2 %v2852_v29  ;;  %v838_v28 = vsel %vm2862_vm0, %v2789_v16, %v834_v32 }
 0x147   : > { %v593_v57 = vsub.f32 1.5, %v592_v0  ;;  %v2870_v47 = vadd.f32 1e-05, %v518_v2  ;;  %v760_v10 = vmul.f32 %v2866_v44, %v2816_v22  ;;  %v664_v53 = vmul.f32 %v2814_v1, %v663_v13 }
 0x148   : > { %v2874_v19 = vpop.eup %1987  ;;  %v2879_v11 = vadd.f32 1e-05, %v517_v45  ;;  %1991 = vrsqrt.f32 %v2868_v6  ;;  %v2907_v4 = vmul.f32 %v838_v28, %v2591_v56  ;;  %vm766_vm10 = vweird.f32 %v2866_v44 }
 0x149   : > { %v2882_v30 = vpop.eup %1989  ;;  %v670_v58 = vmul.f32 %v2874_v19, %v2825_v26  ;;  %v761_v59 = vmul.f32 %v2866_v44, %v760_v10  ;;  %v594_v37 = vmul.f32 %v2821_v27, %v593_v57  ;;  %v668_v0 = vsel %vm667_vm4, %v2814_v1, %v664_v53  ;;  %vm767_vm12 = vmor %vm765_vm9, %vm766_vm10 }
 0x14a   : > { %v770_v31 = vmul.f32 %v2882_v30, %v2818_v40  ;;  %1993 = vrsqrt.f32 %v2879_v11  ;;  %v2904_v2 = vmul.f32 %v668_v0, %v2603_v61  ;;  %vm676_vm7 = vweird.f32 %v2874_v19 }
 0x14b   : > { %v671_v23 = vmul.f32 %v2874_v19, %v670_v58  ;;  %1995 = vrsqrt.f32 %v2870_v47  ;;  %v762_v25 = vmul.f32 0.5, %v761_v59  ;;  %v472_v16 = vpop.xlane.xlu2 %471  ;;  %v598_v1 = vsel %vm597_vm5, %v2821_v27, %v594_v37  ;;  %vm2943_vm8 = vmor %vm675_vm6, %vm676_vm7 }
 0x14c   : > { %v508_v48 = vpop.xlane.xlu1 %507  ;;  %v525_v45 = vmul.f32 %v472_v16, %v2569_v38  ;;  %v771_v57 = vmul.f32 %v2882_v30, %v770_v31  ;;  %v900_v61 = vmul.f32 %v598_v1, %v2607_v3  ;;  %1459 = vmatmul.f32.vlgmr.msra.gmra.mxu1 %v2904_v2  ;;  %1510 = vmatmul.f32.gmra.mxu3 %v2907_v4  ;;  %vm845_vm13 = vweird.f32 %v2868_v6 }
 0x14d   : > { %v672_v13 = vmul.f32 0.5, %v671_v23  ;;  %v506_v32 = vpop.xlane.xlu0 %505  ;;  %v543_v55 = vmul.f32 %v508_v48, %v2569_v38  ;;  %v763_v53 = vsub.f32 1.5, %v762_v25  ;;  %vm615_vm14 = vweird.f32 %v2870_v47 }
 0x14e   : > { %v542_v7 = vmul.f32 %v506_v32, %v2569_v38  ;;  %v2918_v56 = vpop.eup %1991  ;;  %v2920_v58 = vadd.f32 1e-05, %v525_v45  ;;  %1438 = vmatmul.f32.gmra.mxu0 %v900_v61  ;;  %v936_v31 = vmul.f32 %v2800_v42, %v900_v61  ;;  %v772_v48 = vmul.f32 0.5, %v771_v57 }
 0x14f   : > { %v673_v10 = vsub.f32 1.5, %v672_v13  ;;  %v840_v28 = vmul.f32 %v2918_v56, %v2868_v6  ;;  %v2929_v3 = vadd.f32 1e-05, %v543_v55  ;;  %vm605_vm15 = vweird.f32 %v2879_v11 }
 0x150   : > { %v2923_v27 = vpop.eup %1993  ;;  %v2927_v59 = vadd.f32 1e-05, %v542_v7  ;;  %1997 = vrsqrt.f32 %v2920_v58  ;;  %969 = vadd.xlane.f32.xlu2 %v936_v31  ;;  %v764_v7 = vmul.f32 %v2866_v44, %v763_v53  ;;  %v951_v53 = vmul.f32 %v2800_v42, %v2806_v60 }
 0x151   : > { %v2932_v23 = vpop.eup %1995  ;;  %v600_v37 = vmul.f32 %v2923_v27, %v2879_v11  ;;  %v841_v0 = vmul.f32 %v2918_v56, %v840_v28  ;;  %v674_v45 = vmul.f32 %v2874_v19, %v673_v10  ;;  %vm606_vm0 = vweird.f32 %v2923_v27 }
 0x152   : > { %v610_v25 = vmul.f32 %v2932_v23, %v2870_v47  ;;  %1999 = vrsqrt.f32 %v2927_v59  ;;  %v768_v16 = vsel %vm767_vm12, %v2866_v44, %v764_v7  ;;  %vm616_vm1 = vweird.f32 %v2932_v23  ;;  %vm607_vm2 = vmor %vm605_vm15, %vm606_vm0 }
 0x153   : > { %v601_v13 = vmul.f32 %v2923_v27, %v600_v37  ;;  %v842_v32 = vmul.f32 0.5, %v841_v0  ;;  %2001 = vrsqrt.f32 %v2929_v3  ;;  %v492_v55 = vpop.xlane.xlu2 %491  ;;  %v678_v57 = vsel %vm2943_vm8, %v2874_v19, %v674_v45  ;;  %vm3042_vm7 = vmor %vm615_vm14, %vm616_vm1 }
 0x154   : > { %v476_v1 = vpop.xlane.xlu1 %475  ;;  %v611_v61 = vmul.f32 %v2932_v23, %v610_v25  ;;  %v535_v28 = vmul.f32 %v492_v55, %v2569_v38  ;;  %v2961_v37 = vmul.f32 %v678_v57, %v2619_v34  ;;  %v773_v55 = vsub.f32 1.5, %v772_v48 }
 0x155   : > { %v602_v26 = vmul.f32 0.5, %v601_v13  ;;  %v474_v31 = vpop.xlane.xlu0 %473  ;;  %v527_v19 = vmul.f32 %v476_v1, %v2569_v38  ;;  %v2981_v60 = vmul.f32 %v768_v16, %v2616_v33  ;;  %vm776_vm3 = vweird.f32 %v2882_v30 }
 0x156   : > { %v526_v10 = vmul.f32 %v474_v31, %v2569_v38  ;;  %v2967_v0 = vpop.eup %1997  ;;  %v2969_v13 = vadd.f32 1e-05, %v535_v28  ;;  %1462 = vmatmul.f32.gmra.mxu1 %v2961_v37  ;;  %v612_v28 = vmul.f32 0.5, %v611_v61  ;;  %v774_v31 = vmul.f32 %v2882_v30, %v773_v55  ;;  %vm3005_vm4 = vmor %vm775_vm11, %vm776_vm3 }
 0x157   : > { %v603_v25 = vsub.f32 1.5, %v602_v26  ;;  %v680_v34 = vmul.f32 %v2967_v0, %v2920_v58  ;;  %v843_v26 = vsub.f32 1.5, %v842_v32  ;;  %1489 = vmatmul.f32.gmra.mxu2 %v2981_v60  ;;  %v2994_v33 = vadd.f32 1e-05, %v527_v19 }
 0x158   : > { %v2973_v45 = vpop.eup %1999  ;;  %v2977_v22 = vadd.f32 1e-05, %v526_v10  ;;  %2003 = vrsqrt.f32 %v2969_v13  ;;  %999 = vadd.xlane.f32.xlu2 %v951_v53  ;;  %v613_v57 = vsub.f32 1.5, %v612_v28  ;;  %vm846_vm5 = vweird.f32 %v2918_v56 }
 0x159   : > { %v2985_v44 = vpop.eup %2001  ;;  %v681_v48 = vmul.f32 %v2967_v0, %v680_v34  ;;  %v850_v1 = vmul.f32 %v2973_v45, %v2927_v59  ;;  %v604_v32 = vmul.f32 %v2923_v27, %v603_v25  ;;  %v844_v19 = vmul.f32 %v2918_v56, %v843_v26  ;;  %vm847_vm6 = vmor %vm845_vm13, %vm846_vm5 }
 0x15a   : > { %2005 = vrsqrt.f32 %v2977_v22  ;;  %v860_v55 = vmul.f32 %v2985_v44, %v2929_v3  ;;  %vm686_vm8 = vweird.f32 %v2967_v0  ;;  %vm685_vm9 = vweird.f32 %v2920_v58 }
 0x15b   : > { %v682_v7 = vmul.f32 0.5, %v681_v48  ;;  %v460_v61 = vpop.xlane.xlu2 %459  ;;  %v608_v11 = vsel %vm607_vm2, %v2923_v27, %v604_v32  ;;  %v851_v16 = vmul.f32 %v2973_v45, %v850_v1  ;;  %2007 = vrsqrt.f32 %v2994_v33  ;;  %vm3074_vm10 = vmor %vm685_vm9, %vm686_vm8 }
 0x15c   : > { %v519_v10 = vmul.f32 %v460_v61, %v2569_v38  ;;  %v901_v28 = vmul.f32 %v608_v11, %v2637_v9  ;;  %v778_v27 = vsel %vm3005_vm4, %v2882_v30, %v774_v31  ;;  %v848_v30 = vsel %vm847_vm6, %v2918_v56, %v844_v19 }
 0x15d   : > { %v494_v53 = vpop.xlane.xlu0 %493  ;;  %v683_v1 = vsub.f32 1.5, %v682_v7  ;;  %v918_v9 = vmul.f32 %v778_v27, %v2623_v39  ;;  %v852_v31 = vmul.f32 0.5, %v851_v16  ;;  %v861_v11 = vmul.f32 %v2985_v44, %v860_v55 }
 0x15e   : > { %v536_v34 = vmul.f32 %v494_v53, %v2569_v38  ;;  %v3015_v48 = vpop.eup %2003  ;;  %v3018_v40 = vadd.f32 1e-05, %v519_v10  ;;  %1441 = vmatmul.f32.gmra.mxu0 %v901_v28  ;;  %v3049_v53 = vmul.f32 %v848_v30, %v2634_v43  ;;  %v937_v56 = vmul.f32 %v2800_v42, %v901_v28 }
 0x15f   : > { %v780_v32 = vmul.f32 %v3015_v48, %v2969_v13  ;;  %1492 = vmatmul.f32.gmra.mxu2 %v918_v9  ;;  %v954_v25 = vmul.f32 %v2800_v42, %v918_v9  ;;  %v614_v19 = vmul.f32 %v2932_v23, %v613_v57  ;;  %v853_v57 = vsub.f32 1.5, %v852_v31 }
 0x160   : > { %v3024_v26 = vpop.eup %2005  ;;  %v3028_v61 = vadd.f32 1e-05, %v536_v34  ;;  %2009 = vrsqrt.f32 %v3018_v40  ;;  %v684_v34 = vmul.f32 %v2967_v0, %v683_v1  ;;  %1513 = vmatmul.f32.gmra.mxu3 %v3049_v53  ;;  %971 = vadd.xlane.f32.xlu0 %v937_v56  ;;  %v3080_v31 = vmul.f32 0.5, %v861_v11 }
 0x161   : > { %v690_v10 = vmul.f32 %v3024_v26, %v2977_v22  ;;  %v781_v6 = vmul.f32 %v3015_v48, %v780_v32  ;;  %v3056_v27 = vpop.eup %2007  ;;  %1005 = vadd.xlane.f32.xlu2 %v954_v25  ;;  %v618_v55 = vsel %vm3042_vm7, %v2932_v23, %v614_v19  ;;  %v952_v19 = vmul.f32 %v2800_v42, %v2852_v29 }
 0x162   : > { %2011 = vrsqrt.f32 %v3028_v61  ;;  %vm855_vm11 = vweird.f32 %v2927_v59  ;;  %vm865_vm12 = vweird.f32 %v2929_v3  ;;  %v854_v29 = vmul.f32 %v2973_v45, %v853_v57 }
 0x163   : > { %v691_v7 = vmul.f32 %v3024_v26, %v690_v10  ;;  %v510_v47 = vpop.xlane.xlu2 %509  ;;  %v496_v16 = vpop.xlane.xlu1 %495  ;;  %v782_v30 = vmul.f32 0.5, %v781_v6  ;;  %v688_v6 = vsel %vm3074_vm10, %v2967_v0, %v684_v34  ;;  %vm695_vm13 = vweird.f32 %v2977_v22 }
 0x164   : > { %v544_v43 = vmul.f32 %v510_v47, %v2569_v38  ;;  %v537_v28 = vmul.f32 %v496_v16, %v2569_v38  ;;  %v3102_v34 = vmul.f32 %v688_v6, %v2652_v54  ;;  %vm856_vm14 = vweird.f32 %v2973_v45 }
 0x165   : > { %v692_v32 = vmul.f32 0.5, %v691_v7  ;;  %v462_v10 = vpop.xlane.xlu0 %461  ;;  %v902_v7 = vmul.f32 %v618_v55, %v2641_v50  ;;  %v700_v50 = vmul.f32 %v3056_v27, %v2994_v33  ;;  %v783_v0 = vsub.f32 1.5, %v782_v30  ;;  %vm857_vm15 = vmor %vm855_vm11, %vm856_vm14 }
 0x166   : > { %v520_v1 = vmul.f32 %v462_v10, %v2569_v38  ;;  %v3067_v9 = vpop.eup %2009  ;;  %v3070_v56 = vadd.f32 1e-05, %v544_v43  ;;  %v3072_v47 = vadd.f32 1e-05, %v537_v28  ;;  %v863_v43 = vsub.f32 1.5, %v3080_v31  ;;  %1465 = vmatmul.f32.gmra.mxu1 %v3102_v34 }
 0x167   : > { %v693_v23 = vsub.f32 1.5, %v692_v32  ;;  %v938_v25 = vmul.f32 %v2800_v42, %v902_v7  ;;  %1444 = vmatmul.f32.gmra.mxu0 %v902_v7  ;;  %v620_v11 = vmul.f32 %v3067_v9, %v3018_v40  ;;  %vm696_vm0 = vweird.f32 %v3024_v26 }
 0x168   : > { %v3078_v58 = vpop.eup %2011  ;;  %v3082_v39 = vadd.f32 1e-05, %v520_v1  ;;  %2013 = vrsqrt.f32 %v3070_v56  ;;  %v701_v1 = vmul.f32 %v3056_v27, %v700_v50  ;;  %1001 = vadd.xlane.f32.xlu0 %v952_v19  ;;  %v858_v31 = vsel %vm857_vm15, %v2973_v45, %v854_v29  ;;  %vm3131_vm1 = vmor %vm695_vm13, %vm696_vm0 }
 0x169   : > { %v790_v32 = vmul.f32 %v3078_v58, %v3028_v61  ;;  %973 = vadd.xlane.f32.xlu1 %v938_v25  ;;  %v694_v55 = vmul.f32 %v3024_v26, %v693_v23  ;;  %v621_v7 = vmul.f32 %v3067_v9, %v620_v11  ;;  %v3123_v59 = vmul.f32 %v858_v31, %v2655_v12 }
 0x16a   : > { %2015 = vrsqrt.f32 %v3082_v39  ;;  %v784_v11 = vmul.f32 %v3015_v48, %v783_v0  ;;  %vm786_vm2 = vweird.f32 %v3015_v48  ;;  %vm785_vm3 = vweird.f32 %v2969_v13 }
 0x16b   : > { %2017 = vrsqrt.f32 %v3072_v47  ;;  %v478_v10 = vpop.xlane.xlu2 %477  ;;  %v464_v28 = vpop.xlane.xlu1 %463  ;;  %v791_v16 = vmul.f32 %v3078_v58, %v790_v32  ;;  %v698_v12 = vsel %vm3131_vm1, %v3024_v26, %v694_v55  ;;  %1516 = vmatmul.f32.gmra.mxu3 %v3123_v59  ;;  %vm705_vm4 = vweird.f32 %v2994_v33  ;;  %vm787_vm5 = vmor %vm785_vm3, %vm786_vm2 }
 0x16c   : > { %v528_v57 = vmul.f32 %v478_v10, %v2569_v38  ;;  %v521_v30 = vmul.f32 %v464_v28, %v2569_v38  ;;  %v953_v10 = vmul.f32 %v2800_v42, %v2981_v60  ;;  %v702_v28 = vmul.f32 0.5, %v701_v1 }
 0x16d   : > { %v512_v54 = vpop.xlane.xlu0 %511  ;;  %v622_v13 = vmul.f32 0.5, %v621_v7  ;;  %vm625_vm6 = vweird.f32 %v3018_v40  ;;  %v3163_v60 = vmul.f32 %v698_v12, %v2673_v15  ;;  %v788_v1 = vsel %vm787_vm5, %v3015_v48, %v784_v11 }
 0x16e   : > { %v545_v23 = vmul.f32 %v512_v54, %v2569_v38  ;;  %v3120_v6 = vpop.eup %2013  ;;  %v3125_v50 = vadd.f32 1e-05, %v528_v57  ;;  %v3127_v25 = vadd.f32 1e-05, %v521_v30  ;;  %v792_v54 = vmul.f32 0.5, %v791_v16 }
 0x16f   : > { %v870_v32 = vmul.f32 %v3120_v6, %v3070_v56  ;;  %v919_v30 = vmul.f32 %v788_v1, %v2670_v5  ;;  %v864_v31 = vmul.f32 %v2985_v44, %v863_v43  ;;  %vm795_vm7 = vweird.f32 %v3028_v61  ;;  %1468 = vmatmul.f32.gmra.mxu1 %v3163_v60 }
 0x170   : > { %v3136_v45 = vpop.eup %2015  ;;  %v3140_v29 = vadd.f32 1e-05, %v545_v23  ;;  %2019 = vrsqrt.f32 %v3125_v50  ;;  %vm866_vm8 = vweird.f32 %v2985_v44  ;;  %v703_v11 = vsub.f32 1.5, %v702_v28 }
 0x171   : > { %v3146_v22 = vpop.eup %2017  ;;  %v630_v0 = vmul.f32 %v3136_v45, %v3082_v39  ;;  %v871_v26 = vmul.f32 %v3120_v6, %v870_v32  ;;  %1003 = vadd.xlane.f32.xlu1 %v953_v10  ;;  %1495 = vmatmul.f32.gmra.mxu2 %v919_v30  ;;  %vm867_vm9 = vmor %vm865_vm12, %vm866_vm8  ;;  %v955_v43 = vmul.f32 %v2800_v42, %v919_v30  ;;  %vm635_vm10 = vweird.f32 %v3082_v39 }
 0x172   : > { %v800_v55 = vmul.f32 %v3146_v22, %v3072_v47  ;;  %2021 = vrsqrt.f32 %v3140_v29  ;;  %v868_v10 = vsel %vm867_vm9, %v2985_v44, %v864_v31  ;;  %vm805_vm11 = vweird.f32 %v3072_v47 }
 0x173   : > { %2023 = vrsqrt.f32 %v3127_v25  ;;  %v631_v57 = vmul.f32 %v3136_v45, %v630_v0  ;;  %v498_v23 = vpop.xlane.xlu2 %497  ;;  %v514_v19 = vpop.xlane.xlu1 %513  ;;  %v3170_v7 = vmul.f32 0.5, %v871_v26  ;;  %v623_v0 = vsub.f32 1.5, %v622_v13  ;;  %1007 = vadd.xlane.f32.xlu2 %v955_v43 }
 0x174   : > { %v538_v48 = vmul.f32 %v498_v23, %v2569_v38  ;;  %v546_v16 = vmul.f32 %v514_v19, %v2569_v38  ;;  %v801_v5 = vmul.f32 %v3146_v22, %v800_v55  ;;  %v793_v55 = vsub.f32 1.5, %v792_v54 }
 0x175   : > { %v480_v15 = vpop.xlane.xlu0 %479  ;;  %v3193_v23 = vmul.f32 %v868_v10, %v2659_v63  ;;  %v873_v44 = vsub.f32 1.5, %v3170_v7  ;;  %v632_v13 = vmul.f32 0.5, %v631_v57  ;;  %vm626_vm12 = vweird.f32 %v3067_v9 }
 0x176   : > { %v529_v32 = vmul.f32 %v480_v15, %v2569_v38  ;;  %v3181_v12 = vpop.eup %2019  ;;  %v3184_v26 = vadd.f32 1e-05, %v538_v48  ;;  %v3186_v1 = vadd.f32 1e-05, %v546_v16  ;;  %v802_v54 = vmul.f32 0.5, %v801_v5  ;;  %vm627_vm13 = vmor %vm625_vm6, %vm626_vm12 }
 0x177   : > { %v710_v3 = vmul.f32 %v3181_v12, %v3125_v50  ;;  %1519 = vmatmul.f32.gmra.mxu3 %v3193_v23  ;;  %v624_v48 = vmul.f32 %v3067_v9, %v623_v0  ;;  %v704_v43 = vmul.f32 %v3056_v27, %v703_v11  ;;  %vm706_vm14 = vweird.f32 %v3056_v27 }
 0x178   : > { %v3188_v28 = vpop.eup %2021  ;;  %v3195_v30 = vadd.f32 1e-05, %v529_v32  ;;  %2025 = vrsqrt.f32 %v3184_v26  ;;  %v633_v10 = vsub.f32 1.5, %v632_v13  ;;  %vm707_vm15 = vmor %vm705_vm4, %vm706_vm14  ;;  %v794_v0 = vmul.f32 %v3078_v58, %v793_v55 }
 0x179   : > { %v3197_v19 = vpop.eup %2023  ;;  %v880_v31 = vmul.f32 %v3188_v28, %v3140_v29  ;;  %v711_v63 = vmul.f32 %v3181_v12, %v710_v3  ;;  %v628_v3 = vsel %vm627_vm13, %v3067_v9, %v624_v48  ;;  %vm796_vm0 = vweird.f32 %v3078_v58 }
 0x17a   : > { %v640_v15 = vmul.f32 %v3197_v19, %v3127_v25  ;;  %2027 = vrsqrt.f32 %v3195_v30  ;;  %vm645_vm1 = vweird.f32 %v3127_v25  ;;  %v903_v40 = vmul.f32 %v628_v3, %v2688_v8  ;;  %vm797_vm2 = vmor %vm795_vm7, %vm796_vm0 }
 0x17b   : > { %v881_v57 = vmul.f32 %v3188_v28, %v880_v31  ;;  %2029 = vrsqrt.f32 %v3186_v1  ;;  %v3214_v16 = vmul.f32 0.5, %v711_v63  ;;  %v466_v32 = vpop.xlane.xlu2 %465  ;;  %v803_v31 = vsub.f32 1.5, %v802_v54 }
 0x17c   : > { %v641_v5 = vmul.f32 %v3197_v19, %v640_v15  ;;  %v708_v11 = vsel %vm707_vm15, %v3056_v27, %v704_v43  ;;  %vm875_vm3 = vweird.f32 %v3070_v56  ;;  %v798_v54 = vsel %vm797_vm2, %v3078_v58, %v794_v0  ;;  %1447 = vmatmul.f32.gmra.mxu0 %v903_v40 }
 0x17d   : > { %v3226_v63 = vmul.f32 0.5, %v881_v57  ;;  %v482_v9 = vpop.xlane.xlu0 %481  ;;  %v3237_v55 = vmul.f32 %v708_v11, %v2677_v36  ;;  %v522_v15 = vmul.f32 %v466_v32, %v2569_v38  ;;  %vm885_vm4 = vweird.f32 %v3140_v29 }
 0x17e   : > { %v3233_v13 = vpop.eup %2025  ;;  %v642_v33 = vmul.f32 0.5, %v641_v5  ;;  %v713_v8 = vsub.f32 1.5, %v3214_v16  ;;  %v920_v27 = vmul.f32 %v798_v54, %v2691_v18  ;;  %v939_v48 = vmul.f32 %v2800_v42, %v903_v40 }
 0x17f   : > { %v810_v61 = vmul.f32 %v3233_v13, %v3184_v26  ;;  %vm715_vm5 = vweird.f32 %v3125_v50  ;;  %1471 = vmatmul.f32.gmra.mxu1 %v3237_v55  ;;  %v3255_v5 = vadd.f32 1e-05, %v522_v15  ;;  %v530_v16 = vmul.f32 %v482_v9, %v2569_v38 }
 0x180   : > { %v3241_v57 = vpop.eup %2027  ;;  %v634_v43 = vmul.f32 %v3136_v45, %v633_v10  ;;  %1498 = vmatmul.f32.gmra.mxu2 %v920_v27  ;;  %975 = vadd.xlane.f32.xlu0 %v939_v48  ;;  %vm636_vm6 = vweird.f32 %v3136_v45  ;;  %v804_v3 = vmul.f32 %v3146_v22, %v803_v31  ;;  %v643_v0 = vsub.f32 1.5, %v642_v33 }
 0x181   : > { %v3249_v36 = vpop.eup %2029  ;;  %v720_v58 = vmul.f32 %v3241_v57, %v3195_v30  ;;  %v811_v32 = vmul.f32 %v3233_v13, %v810_v61  ;;  %2031 = vrsqrt.f32 %v3255_v5  ;;  %v3266_v11 = vadd.f32 1e-05, %v530_v16  ;;  %vm637_vm7 = vmor %vm635_vm10, %vm636_vm6 }
 0x182   : > { %v890_v18 = vmul.f32 %v3249_v36, %v3186_v1  ;;  %v638_v9 = vsel %vm637_vm7, %v3136_v45, %v634_v43  ;;  %vm806_vm8 = vweird.f32 %v3146_v22  ;;  %v883_v54 = vsub.f32 1.5, %v3226_v63 }
 0x183   : > { %v721_v40 = vmul.f32 %v3241_v57, %v720_v58  ;;  %v812_v38 = vmul.f32 0.5, %v811_v32  ;;  %2033 = vrsqrt.f32 %v3266_v11  ;;  %v904_v33 = vmul.f32 %v638_v9, %v2703_v20  ;;  %vm807_vm9 = vmor %vm805_vm11, %vm806_vm8 }
 0x184   : > { %v891_v10 = vmul.f32 %v3249_v36, %v890_v18  ;;  %vm815_vm10 = vweird.f32 %v3184_v26  ;;  %v808_v39 = vsel %vm807_vm9, %v3146_v22, %v804_v3  ;;  %v874_v45 = vmul.f32 %v3120_v6, %v873_v44 }
 0x185   : > { %v722_v31 = vmul.f32 0.5, %v721_v40  ;;  %v813_v15 = vsub.f32 1.5, %v812_v38  ;;  %v921_v63 = vmul.f32 %v808_v39, %v2708_v21  ;;  %vm876_vm12 = vweird.f32 %v3120_v6  ;;  %1450 = vmatmul.f32.gmra.mxu0 %v904_v33 }
 0x186   : > { %v892_v48 = vmul.f32 0.5, %v891_v10  ;;  %vm877_vm13 = vmor %vm875_vm3, %vm876_vm12  ;;  %v956_v20 = vmul.f32 %v2800_v42, %v920_v27  ;;  %v940_v47 = vmul.f32 %v2800_v42, %v904_v33  ;;  %v644_v22 = vmul.f32 %v3197_v19, %v643_v0 }
 0x187   : > { %v723_v61 = vsub.f32 1.5, %v722_v31  ;;  %vm646_vm11 = vweird.f32 %v3197_v19  ;;  %v3291_v7 = vpop.eup %2031  ;;  %v878_v44 = vsel %vm877_vm13, %v3120_v6, %v874_v45  ;;  %v714_v21 = vmul.f32 %v3181_v12, %v713_v8 }
 0x188   : > { %vm647_vm14 = vmor %vm645_vm1, %vm646_vm11  ;;  %vm716_vm15 = vweird.f32 %v3181_v12  ;;  %v884_v56 = vmul.f32 %v3188_v28, %v883_v54  ;;  %v650_v27 = vmul.f32 %v3291_v7, %v3255_v5  ;;  %1501 = vmatmul.f32.gmra.mxu2 %v921_v63  ;;  %v3302_v58 = vmul.f32 %v878_v44, %v2700_v51  ;;  %1009 = vadd.xlane.f32.xlu0 %v956_v20 }
 0x189   : > { %v648_v16 = vsel %vm647_vm14, %v3197_v19, %v644_v22  ;;  %vm717_vm0 = vmor %vm715_vm5, %vm716_vm15  ;;  %vm886_vm1 = vweird.f32 %v3188_v28  ;;  %v2034_v6 = vpop.eup %2033  ;;  %vm725_vm2 = vweird.f32 %v3195_v30  ;;  %977 = vadd.xlane.f32.xlu1 %v940_v47  ;;  %v724_v19 = vmul.f32 %v3241_v57, %v723_v61 }
 0x18a   : > { %v905_v25 = vmul.f32 %v648_v16, %v2718_v24  ;;  %v718_v8 = vsel %vm717_vm0, %v3181_v12, %v714_v21  ;;  %vm3313_vm3 = vmor %vm885_vm4, %vm886_vm1  ;;  %v651_v50 = vmul.f32 %v3291_v7, %v650_v27  ;;  %v730_v43 = vmul.f32 %v2034_v6, %v3266_v11  ;;  %1522 = vmatmul.f32.gmra.mxu3 %v3302_v58 }
 0x18b   : > { %v3322_v32 = vmul.f32 %v718_v8, %v2721_v14  ;;  %v888_v24 = vsel %vm3313_vm3, %v3188_v28, %v884_v56  ;;  %v893_v29 = vsub.f32 1.5, %v892_v48  ;;  %vm895_vm4 = vweird.f32 %v3186_v1 }
 0x18c   : > { %vm726_vm5 = vweird.f32 %v3241_v57  ;;  %v814_v12 = vmul.f32 %v3233_v13, %v813_v15  ;;  %v652_v18 = vmul.f32 0.5, %v651_v50  ;;  %v731_v3 = vmul.f32 %v2034_v6, %v730_v43 }
 0x18d   : > { %1474 = vmatmul.f32.gmra.mxu1 %v3322_v32  ;;  %v957_v0 = vmul.f32 %v2800_v42, %v921_v63  ;;  %vm3334_vm6 = vmor %vm725_vm2, %vm726_vm5  ;;  %vm816_vm7 = vweird.f32 %v3233_v13  ;;  %v3340_v28 = vmul.f32 %v888_v24, %v2727_v35  ;;  %v941_v40 = vmul.f32 %v2800_v42, %v905_v25  ;;  %1453 = vmatmul.f32.gmra.mxu0 %v905_v25 }
 0x18e   : > { %v728_v38 = vsel %vm3334_vm6, %v3241_v57, %v724_v19  ;;  %vm817_vm8 = vmor %vm815_vm10, %vm816_vm7  ;;  %vm896_vm9 = vweird.f32 %v3249_v36  ;;  %v653_v30 = vsub.f32 1.5, %v652_v18  ;;  %v732_v10 = vmul.f32 0.5, %v731_v3 }
 0x18f   : > { %v818_v9 = vsel %vm817_vm8, %v3233_v13, %v814_v12  ;;  %vm656_vm12 = vweird.f32 %v3291_v7  ;;  %vm735_vm13 = vweird.f32 %v3266_v11  ;;  %v894_v54 = vmul.f32 %v3249_v36, %v893_v29  ;;  %vm897_vm10 = vmor %vm895_vm4, %vm896_vm9 }
 0x190   : > { %v922_v35 = vmul.f32 %v818_v9, %v2736_v17  ;;  %vm736_vm11 = vweird.f32 %v2034_v6  ;;  %vm655_vm14 = vweird.f32 %v3255_v5  ;;  %v733_v26 = vsub.f32 1.5, %v732_v10  ;;  %1011 = vadd.xlane.f32.xlu0 %v957_v0  ;;  %v3395_v9 = vld [vmem:[%s3723_s3] ss:$0 sm:$0xff] }
 0x191   : > { %v913_v57 = vmul.f32 %v728_v38, %v2743_v46  ;;  %v654_v13 = vmul.f32 %v3291_v7, %v653_v30  ;;  %979 = vadd.xlane.f32.xlu1 %v941_v40  ;;  %vm657_vm15 = vmor %vm655_vm14, %vm656_vm12  ;;  %v898_v5 = vsel %vm897_vm10, %v3249_v36, %v894_v54  ;;  %v944_v45 = vmul.f32 %v2800_v42, %v2961_v37 }
 0x192   : > { %1504 = vmatmul.f32.gmra.mxu2 %v922_v35  ;;  %1525 = vmatmul.f32.gmra.mxu3 %v3340_v28  ;;  %v734_v31 = vmul.f32 %v2034_v6, %v733_v26  ;;  %vm737_vm0 = vmor %vm735_vm13, %vm736_vm11  ;;  %v958_v1 = vmul.f32 %v2800_v42, %v922_v35  ;;  %v930_v39 = vmul.f32 %v898_v5, %v2739_v41  ;;  %vm1692_vm1 = vcmask 1041409  }
 0x193   : > { %v658_v17 = vsel %vm657_vm15, %v3291_v7, %v654_v13  ;;  %v945_v36 = vmul.f32 %v2800_v42, %v3102_v34  ;;  %v959_v41 = vmul.f32 %v2800_v42, %v2847_v62  ;;  %v960_v37 = vmul.f32 %v2800_v42, %v2907_v4  ;;  %v2131_v4 = vld [vmem:[#allocation5] ss:$0 sm:$0xff] }
 0x194   : > { %v906_v46 = vmul.f32 %v658_v17, %v2753_v49  ;;  %v738_v33 = vsel %vm737_vm0, %v2034_v6, %v734_v31  ;;  %v943_v49 = vmul.f32 %v2800_v42, %v2904_v2  ;;  %v946_v61 = vmul.f32 %v2800_v42, %v3163_v60 }
 0x195   : > { %1477 = vmatmul.f32.gmra.mxu1 %v913_v57  ;;  %v914_v11 = vmul.f32 %v738_v33, %v2759_v52  ;;  %v962_v52 = vmul.f32 %v2800_v42, %v3123_v59  ;;  %v961_v2 = vmul.f32 %v2800_v42, %v3049_v53  ;;  %v963_v62 = vmul.f32 %v2800_v42, %v3193_v23 }
 0x196   : > { %v942_v15 = vmul.f32 %v2800_v42, %v906_v46  ;;  %1456 = vmatmul.f32.gmra.mxu0 %v906_v46  ;;  %v947_v34 = vmul.f32 %v2800_v42, %v3237_v55  ;;  %v948_v59 = vmul.f32 %v2131_v4, %v3322_v32  ;;  %v964_v60 = vmul.f32 %v2131_v4, %v3302_v58 }
 0x197   : > { %v950_v48 = vmul.f32 %v2131_v4, %v914_v11  ;;  %v949_v63 = vmul.f32 %v2131_v4, %v913_v57  ;;  %v965_v53 = vmul.f32 %v2131_v4, %v3340_v28  ;;  %v966_v55 = vmul.f32 %v2131_v4, %v930_v39 }
 0x198   : > { %981 = vadd.xlane.f32.xlu2 %v942_v15  ;;  %985 = vadd.xlane.f32.xlu0 %v944_v45  ;;  %vm1694_vm2 = vcmask 1042434   ;;  %vm1696_vm3 = vcmask 1043459   ;;  %vm1698_vm4 = vcmask 1044484   ;;  %vm1700_vm5 = vcmask 1045509  }
 0x199   : > { %1013 = vadd.xlane.f32.xlu1 %v958_v1  ;;  %vm1704_vm6 = vcmask 1047559   ;;  %vm1702_vm7 = vcmask 1046534  }
 0x19a   : > { %1528 = vmatmul.f32.gmra.mxu3 %v930_v39 }
 0x19d   : > { %1480 = vmatmul.f32.gmra.mxu1 %v914_v11 }
 0x1a0   : > { %983 = vadd.xlane.f32.xlu2 %v943_v49  ;;  %987 = vadd.xlane.f32.xlu0 %v945_v36 }
 0x1a1   : > { %1015 = vadd.xlane.f32.xlu1 %v959_v41 }
 0x1a8   : > { %1017 = vadd.xlane.f32.xlu2 %v960_v37  ;;  %1021 = vadd.xlane.f32.xlu0 %v962_v52 }
 0x1a9   : > { %989 = vadd.xlane.f32.xlu1 %v946_v61 }
 0x1b0   : > { %1019 = vadd.xlane.f32.xlu2 %v961_v2  ;;  %1023 = vadd.xlane.f32.xlu0 %v963_v62 }
 0x1b1   : > { %991 = vadd.xlane.f32.xlu1 %v947_v34 }
 0x1b3   : > { %v968_v23 = vpop.xlane.xlu1 %967 }
 0x1b8   : > { %993 = vadd.xlane.f32.xlu2 %v948_v59  ;;  %997 = vadd.xlane.f32.xlu0 %v950_v48 }
 0x1b9   : > { %1025 = vadd.xlane.f32.xlu1 %v964_v60 }
 0x1bb   : > { %v1436_v18 = vpop.f32.mrf.mxu0 }
 0x1bc   : > { %v1437_v31 = vadd.f32 %v3395_v9, %v1436_v18 }
 0x1c0   : > { %995 = vadd.xlane.f32.xlu2 %v949_v63 }
 0x1c1   : > { %1027 = vadd.xlane.f32.xlu1 %v965_v53 }
 0x1c3   : > { %v970_v20 = vpop.xlane.xlu2 %969 }
 0x1c4   : > { %v1031_v42 = vmax.f32 %v968_v23, %v970_v20 }
 0x1c6   : > { %v1032_v47 = vrot.slane %v1031_v42, 4 }
 0x1c8   : > { %1029 = vadd.xlane.f32.xlu2 %v966_v55  ;;  %v1033_v22 = vmax.f32 %v1031_v42, %v1032_v47 }
 0x1ca   : > { %v1034_v7 = vrot.slane %v1033_v22, 2 }
 0x1cb   : > { %v1000_v40 = vpop.xlane.xlu2 %999  ;;  %v1439_v26 = vpop.f32.mrf.mxu0 }
 0x1cc   : > { %v1035_v44 = vmax.f32 %v1033_v22, %v1034_v7  ;;  %v1440_v33 = vadd.f32 %v3395_v9, %v1439_v26 }
 0x1ce   : > { %v1036_v21 = vrot.slane %v1035_v44, 1 }
 0x1d0   : > { %v1037_v56 = vmax.f32 %v1035_v44, %v1036_v21 }
 0x1d2   : > { %v1143_v27 = vsub.f32 %v968_v23, %v1037_v56  ;;  %v1144_v58 = vsub.f32 %v970_v20, %v1037_v56 }
 0x1d3   : > { %v972_v32 = vpop.xlane.xlu0 %971 }
 0x1d4   : > { %v1175_v16 = vmul.f32 1.442695, %v1143_v27  ;;  %v1177_v6 = vmul.f32 1.442695, %v1144_v58  ;;  %v1006_v47 = vpop.xlane.xlu2 %1005 }
 0x1d6   : > { %2035 = vpow2.f32 %v1175_v16 }
 0x1d7   : > { %2037 = vpow2.f32 %v1177_v6 }
 0x1db   : > { %v1002_v30 = vpop.xlane.xlu0 %1001 }
 0x1dc   : > { %v2036_v25 = vpop.eup %2035  ;;  %v974_v24 = vpop.xlane.xlu1 %973  ;;  %v1087_v10 = vmax.f32 %v1000_v40, %v1002_v30 }
 0x1dd   : > { %v2038_v8 = vpop.eup %2037  ;;  %v1038_v12 = vmax.f32 %v972_v32, %v974_v24 }
 0x1de   : > { %v1239_v51 = vadd.f32 %v2038_v8, %v2036_v25  ;;  %v1088_v54 = vrot.slane %v1087_v10, 4 }
 0x1df   : > { %v1039_v0 = vrot.slane %v1038_v12, 4 }
 0x1e0   : > { %v1240_v19 = vrot.slane %v1239_v51, 4  ;;  %v1089_v13 = vmax.f32 %v1087_v10, %v1088_v54 }
 0x1e1   : > { %v1040_v28 = vmax.f32 %v1038_v12, %v1039_v0 }
 0x1e2   : > { %v1241_v50 = vadd.f32 %v1240_v19, %v1239_v51  ;;  %v1090_v15 = vrot.slane %v1089_v13, 2  ;;  %v1484_v19 = vpop.f32.mrf.mxu2 }
 0x1e3   : > { %v1041_v38 = vrot.slane %v1040_v28, 2 }
 0x1e4   : > { %v1242_v43 = vrot.slane %v1241_v50, 2  ;;  %v1091_v36 = vmax.f32 %v1089_v13, %v1090_v15  ;;  %v1004_v7 = vpop.xlane.xlu1 %1003  ;;  %v1442_v13 = vpop.f32.mrf.mxu0 }
 0x1e5   : > { %v1042_v35 = vmax.f32 %v1040_v28, %v1041_v38  ;;  %v1094_v21 = vmax.f32 %v1004_v7, %v1006_v47 }
 0x1e6   : > { %v1243_v29 = vadd.f32 %v1242_v43, %v1241_v50  ;;  %v1092_v61 = vrot.slane %v1091_v36, 1 }
 0x1e7   : > { %v1043_v57 = vrot.slane %v1042_v35, 1  ;;  %v1095_v58 = vrot.slane %v1094_v21, 4 }
 0x1e8   : > { %v1244_v3 = vrot.slane %v1243_v29, 1  ;;  %v1093_v2 = vmax.f32 %v1091_v36, %v1092_v61 }
 0x1e9   : > { %v1044_v5 = vmax.f32 %v1042_v35, %v1043_v57  ;;  %v1485_v35 = vadd.f32 %v3395_v9, %v1484_v19 }
 0x1ea   : > { %v1245_v14 = vadd.f32 %v1244_v3, %v1243_v29  ;;  %v1159_v62 = vsub.f32 %v1000_v40, %v1093_v2  ;;  %v1160_v34 = vsub.f32 %v1002_v30, %v1093_v2  ;;  %v1487_v30 = vpop.f32.mrf.mxu2 }
 0x1eb   : > { %v1145_v39 = vsub.f32 %v972_v32, %v1044_v5  ;;  %v1146_v45 = vsub.f32 %v974_v24, %v1044_v5  ;;  %v1488_v54 = vadd.f32 %v3395_v9, %v1487_v30  ;;  %v1008_v5 = vpop.xlane.xlu2 %1007 }
 0x1ec   : > { %2039 = vrcp.f32 %v1245_v14  ;;  %v1207_v4 = vmul.f32 1.442695, %v1159_v62  ;;  %v1209_v59 = vmul.f32 1.442695, %v1160_v34 }
 0x1ed   : > { %v1179_v41 = vmul.f32 1.442695, %v1145_v39  ;;  %v1181_v37 = vmul.f32 1.442695, %v1146_v45 }
 0x1ef   : > { %2041 = vpow2.f32 %v1179_v41 }
 0x1f0   : > { %2043 = vpow2.f32 %v1181_v37 }
 0x1f1   : > { %2045 = vpow2.f32 %v1207_v4  ;;  %v1445_v4 = vpop.f32.mrf.mxu0 }
 0x1f2   : > { %v2040_v17 = vpop.eup %2039  ;;  %2047 = vpow2.f32 %v1209_v59 }
 0x1f3   : > { %v1367_v46 = vmul.f32 %v2040_v17, %v2036_v25  ;;  %v1368_v1 = vmul.f32 %v2040_v17, %v2038_v8  ;;  %v1096_v25 = vmax.f32 %v1094_v21, %v1095_v58  ;;  %v3404_v28 = vpop.xlane.xlu0 %975 }
 0x1f5   : > { %v1532_v11 = vmul.f32 %v1437_v31, %v1367_v46  ;;  %v1533_v49 = vmul.f32 %v1440_v33, %v1368_v1  ;;  %v2042_v48 = vpop.eup %2041  ;;  %v1097_v51 = vrot.slane %v1096_v25, 2 }
 0x1f6   : > { %v3401_v60 = vpop.eup %2043 }
 0x1f7   : > { %v3399_v52 = vadd.f32 %v1533_v49, %v1532_v11  ;;  %v1246_v63 = vadd.f32 %v3401_v60, %v2042_v48  ;;  %v2046_v20 = vpop.eup %2045  ;;  %v1098_v43 = vmax.f32 %v1096_v25, %v1097_v51 }
 0x1f8   : > { %v2048_v42 = vpop.eup %2047 }
 0x1f9   : > { %v1247_v53 = vrot.slane %v1246_v63, 4  ;;  %v1295_v22 = vadd.f32 %v2048_v42, %v2046_v20  ;;  %v1099_v24 = vrot.slane %v1098_v43, 1  ;;  %v1565_v37 = vrot.slane %v3399_v52, 4 }
 0x1fb   : > { %v1248_v23 = vadd.f32 %v1247_v53, %v1246_v63  ;;  %v1296_v56 = vrot.slane %v1295_v22, 4  ;;  %v1100_v18 = vmax.f32 %v1098_v43, %v1099_v24  ;;  %v1010_v46 = vpop.xlane.xlu0 %1009  ;;  %v1566_v53 = vadd.f32 %v1565_v37, %v3399_v52 }
 0x1fc   : > { %v1101_v15 = vmax.f32 %v1008_v5, %v1010_v46  ;;  %v978_v39 = vpop.xlane.xlu1 %977 }
 0x1fd   : > { %v1249_v55 = vrot.slane %v1248_v23, 2  ;;  %v1297_v16 = vadd.f32 %v1296_v56, %v1295_v22  ;;  %v1161_v0 = vsub.f32 %v1004_v7, %v1100_v18  ;;  %v1162_v14 = vsub.f32 %v1006_v47, %v1100_v18 }
 0x1fe   : > { %v1045_v11 = vmax.f32 %v3404_v28, %v978_v39  ;;  %v1102_v36 = vrot.slane %v1101_v15, 4  ;;  %v1446_v7 = vadd.f32 %v3395_v9, %v1445_v4 }
 0x1ff   : > { %v1250_v44 = vadd.f32 %v1249_v55, %v1248_v23  ;;  %v1298_v8 = vrot.slane %v1297_v16, 2  ;;  %v1211_v40 = vmul.f32 1.442695, %v1161_v0  ;;  %v1213_v38 = vmul.f32 1.442695, %v1162_v14  ;;  %v1490_v55 = vpop.f32.mrf.mxu2 }
 0x200   : > { %v1046_v41 = vrot.slane %v1045_v11, 4  ;;  %v1103_v2 = vmax.f32 %v1101_v15, %v1102_v36 }
 0x201   : > { %v1251_v27 = vrot.slane %v1250_v44, 1  ;;  %v1299_v50 = vadd.f32 %v1298_v8, %v1297_v16  ;;  %v1567_v16 = vrot.slane %v1566_v53, 2 }
 0x202   : > { %v1047_v62 = vmax.f32 %v1045_v11, %v1046_v41  ;;  %v1104_v59 = vrot.slane %v1103_v2, 2 }
 0x203   : > { %v1252_v6 = vadd.f32 %v1251_v27, %v1250_v44  ;;  %v1300_v32 = vrot.slane %v1299_v50, 1 }
 0x204   : > { %v1048_v63 = vrot.slane %v1047_v62, 2 }
 0x205   : > { %2049 = vrcp.f32 %v1252_v6  ;;  %v1301_v29 = vadd.f32 %v1300_v32, %v1299_v50 }
 0x206   : > { %v1049_v44 = vmax.f32 %v1047_v62, %v1048_v63 }
 0x207   : > { %2051 = vrcp.f32 %v1301_v29  ;;  %v1568_v29 = vadd.f32 %v1567_v16, %v1566_v53 }
 0x208   : > { %2053 = vpow2.f32 %v1211_v40  ;;  %v1050_v58 = vrot.slane %v1049_v44, 1 }
 0x209   : > { %2055 = vpow2.f32 %v1213_v38 }
 0x20a   : > { %v1051_v52 = vmax.f32 %v1049_v44, %v1050_v58 }
 0x20b   : > { %v2050_v12 = vpop.eup %2049  ;;  %v3433_v11 = vpop.xlane.xlu2 %981 }
 0x20c   : > { %v1369_v3 = vmul.f32 %v2050_v12, %v2042_v48  ;;  %v1443_v48 = vadd.f32 %v3395_v9, %v1442_v13  ;;  %v1370_v22 = vmul.f32 %v2050_v12, %v3401_v60  ;;  %v1147_v32 = vsub.f32 %v3404_v28, %v1051_v52  ;;  %v3423_v60 = vpop.xlane.xlu0 %1011 }
 0x20d   : > { %v2052_v10 = vpop.eup %2051  ;;  %v1148_v24 = vsub.f32 %v978_v39, %v1051_v52  ;;  %v1569_v28 = vrot.slane %v1568_v29, 1 }
 0x20e   : > { %v1383_v26 = vmul.f32 %v2052_v10, %v2046_v20  ;;  %v1384_v57 = vmul.f32 %v2052_v10, %v2048_v42  ;;  %v3408_v1 = vpop.eup %2053  ;;  %v1105_v20 = vmax.f32 %v1103_v2, %v1104_v59  ;;  %v3418_v42 = vpop.xlane.xlu1 %979  ;;  %v1534_v47 = vmul.f32 %v1443_v48, %v1369_v3 }
 0x20f   : > { %v3410_v45 = vpop.eup %2055  ;;  %v1535_v27 = vmul.f32 %v1446_v7, %v1370_v22  ;;  %v1183_v40 = vmul.f32 1.442695, %v1147_v32  ;;  %v1185_v38 = vmul.f32 1.442695, %v1148_v24  ;;  %v1493_v10 = vpop.f32.mrf.mxu2  ;;  %v1570_v36 = vadd.f32 %v1569_v28, %v1568_v29 }
 0x210   : > { %v1548_v17 = vmul.f32 %v1485_v35, %v1383_v26  ;;  %v1549_v31 = vmul.f32 %v1488_v54, %v1384_v57  ;;  %v1302_v49 = vadd.f32 %v3410_v45, %v3408_v1  ;;  %v1106_v56 = vrot.slane %v1105_v20, 1 }
 0x211   : > { %v1571_v8 = vadd.f32 %v1535_v27, %v1534_v47 }
 0x212   : > { %v1620_v33 = vadd.f32 %v1549_v31, %v1548_v17  ;;  %v1303_v61 = vrot.slane %v1302_v49, 4  ;;  %v1107_v25 = vmax.f32 %v1105_v20, %v1106_v56  ;;  %v1491_v17 = vadd.f32 %v3395_v9, %v1490_v55 }
 0x213   : > { %v1572_v43 = vrot.slane %v1571_v8, 4  ;;  %v1494_v31 = vadd.f32 %v3395_v9, %v1493_v10  ;;  %v3456_v16 = vpop.xlane.xlu2 %983 }
 0x214   : > { %v1304_v34 = vadd.f32 %v1303_v61, %v1302_v49  ;;  %v1163_v19 = vsub.f32 %v1008_v5, %v1107_v25  ;;  %v1164_v50 = vsub.f32 %v1010_v46, %v1107_v25  ;;  %v1621_v0 = vrot.slane %v1620_v33, 4 }
 0x215   : > { %v1573_v14 = vadd.f32 %v1572_v43, %v1571_v8 }
 0x216   : > { %v1305_v23 = vrot.slane %v1304_v34, 2  ;;  %v1215_v12 = vmul.f32 1.442695, %v1163_v19  ;;  %v1217_v18 = vmul.f32 1.442695, %v1164_v50  ;;  %v3425_v3 = vpop.xlane.xlu1 %1013  ;;  %v1622_v26 = vadd.f32 %v1621_v0, %v1620_v33  ;;  %v1448_v19 = vpop.f32.mrf.mxu0 }
 0x217   : > { %v1108_v30 = vmax.f32 %v3423_v60, %v3425_v3  ;;  %v1574_v35 = vrot.slane %v1573_v14, 2  ;;  %v1052_v33 = vmax.f32 %v3418_v42, %v3433_v11 }
 0x218   : > { %v1306_v21 = vadd.f32 %v1305_v23, %v1304_v34  ;;  %v1623_v61 = vrot.slane %v1622_v26, 2 }
 0x219   : > { %v1109_v54 = vrot.slane %v1108_v30, 4  ;;  %v1575_v57 = vadd.f32 %v1574_v35, %v1573_v14  ;;  %v1053_v59 = vrot.slane %v1052_v33, 4 }
 0x21a   : > { %v1307_v6 = vrot.slane %v1306_v21, 1  ;;  %v1624_v22 = vadd.f32 %v1623_v61, %v1622_v26 }
 0x21b   : > { %v1576_v15 = vrot.slane %v1575_v57, 1  ;;  %v1110_v39 = vmax.f32 %v1108_v30, %v1109_v54  ;;  %v1054_v47 = vmax.f32 %v1052_v33, %v1053_v59 }
 0x21c   : > { %v1308_v51 = vadd.f32 %v1307_v6, %v1306_v21  ;;  %v1496_v6 = vpop.f32.mrf.mxu2  ;;  %v1625_v52 = vrot.slane %v1624_v22, 1 }
 0x21d   : > { %v1577_v62 = vadd.f32 %v1576_v15, %v1575_v57  ;;  %v1111_v23 = vrot.slane %v1110_v39, 2  ;;  %v1055_v56 = vrot.slane %v1054_v47, 2 }
 0x21e   : > { %2057 = vrcp.f32 %v1308_v51  ;;  %v3439_v41 = vpop.xlane.xlu1 %1015  ;;  %v1626_v35 = vadd.f32 %v1625_v52, %v1624_v22 }
 0x21f   : > { %2059 = vpow2.f32 %v1215_v12  ;;  %v3452_v53 = vsel %vm1692_vm1, %v1577_v62, %v1570_v36  ;;  %v1112_v58 = vmax.f32 %v1110_v39, %v1111_v23  ;;  %v1056_v50 = vmax.f32 %v1054_v47, %v1055_v56  ;;  %v3467_v39 = vpop.xlane.xlu2 %1017 }
 0x220   : > { %2061 = vpow2.f32 %v1217_v18  ;;  %v1115_v61 = vmax.f32 %v3439_v41, %v3467_v39 }
 0x221   : > { %2063 = vpow2.f32 %v1183_v40  ;;  %v1113_v18 = vrot.slane %v1112_v58, 1  ;;  %v1057_v0 = vrot.slane %v1056_v50, 1 }
 0x222   : > { %2065 = vpow2.f32 %v1185_v38 }
 0x223   : > { %v1058_v54 = vmax.f32 %v1056_v50, %v1057_v0 }
 0x224   : > { %v2058_v13 = vpop.eup %2057  ;;  %v1499_v62 = vpop.f32.mrf.mxu2 }
 0x225   : > { %v1385_v5 = vmul.f32 %v2058_v13, %v3408_v1  ;;  %v1386_v46 = vmul.f32 %v2058_v13, %v3410_v45  ;;  %v3435_v49 = vpop.eup %2059  ;;  %v3443_v45 = vpop.xlane.xlu0 %985  ;;  %v1500_v56 = vadd.f32 %v3395_v9, %v1499_v62 }
 0x226   : > { %v3441_v37 = vpop.eup %2061  ;;  %v1059_v43 = vmax.f32 %v3456_v16, %v3443_v45  ;;  %v3460_v32 = vpop.xlane.xlu1 %989 }
 0x227   : > { %v1550_v2 = vmul.f32 %v1491_v17, %v1385_v5  ;;  %v1551_v1 = vmul.f32 %v1494_v31, %v1386_v46  ;;  %v3445_v34 = vpop.eup %2063  ;;  %v1309_v4 = vadd.f32 %v3441_v37, %v3435_v49  ;;  %v1114_v5 = vmax.f32 %v1112_v58, %v1113_v18  ;;  %v3489_v18 = vpop.xlane.xlu2 %1019 }
 0x228   : > { %v3449_v48 = vpop.eup %2065  ;;  %v1060_v40 = vrot.slane %v1059_v43, 4  ;;  %v1149_v46 = vsub.f32 %v3418_v42, %v1058_v54  ;;  %v1451_v42 = vpop.f32.mrf.mxu0 }
 0x229   : > { %v1627_v63 = vadd.f32 %v1551_v1, %v1550_v2  ;;  %v1310_v20 = vrot.slane %v1309_v4, 4  ;;  %v1253_v55 = vadd.f32 %v3449_v48, %v3445_v34 }
 0x22a   : > { %v1061_v26 = vmax.f32 %v1059_v43, %v1060_v40  ;;  %v1187_v47 = vmul.f32 1.442695, %v1149_v46 }
 0x22b   : > { %v1628_v7 = vrot.slane %v1627_v63, 4  ;;  %v1311_v44 = vadd.f32 %v1310_v20, %v1309_v4  ;;  %v1254_v21 = vrot.slane %v1253_v55, 4  ;;  %v1150_v4 = vsub.f32 %v3433_v11, %v1058_v54 }
 0x22c   : > { %v1062_v15 = vrot.slane %v1061_v26, 2 }
 0x22d   : > { %v1629_v27 = vadd.f32 %v1628_v7, %v1627_v63  ;;  %v1312_v25 = vrot.slane %v1311_v44, 2  ;;  %v1255_v8 = vadd.f32 %v1254_v21, %v1253_v55  ;;  %v3462_v14 = vpop.xlane.xlu0 %987  ;;  %v1116_v63 = vrot.slane %v1115_v61, 4 }
 0x22e   : > { %v1066_v10 = vmax.f32 %v3462_v14, %v3460_v32  ;;  %v1063_v1 = vmax.f32 %v1061_v26, %v1062_v15  ;;  %v3475_v20 = vpop.xlane.xlu1 %991  ;;  %v1165_v55 = vsub.f32 %v3423_v60, %v1114_v5  ;;  %v1449_v21 = vadd.f32 %v3395_v9, %v1448_v19 }
 0x22f   : > { %v1630_v51 = vrot.slane %v1629_v27, 2  ;;  %v1313_v24 = vadd.f32 %v1312_v25, %v1311_v44  ;;  %v1256_v29 = vrot.slane %v1255_v8, 2  ;;  %v1117_v7 = vmax.f32 %v1115_v61, %v1116_v63 }
 0x230   : > { %v1067_v17 = vrot.slane %v1066_v10, 4  ;;  %v1064_v23 = vrot.slane %v1063_v1, 1  ;;  %v1497_v44 = vadd.f32 %v3395_v9, %v1496_v6  ;;  %v1452_v25 = vadd.f32 %v3395_v9, %v1451_v42 }
 0x231   : > { %v1631_v12 = vadd.f32 %v1630_v51, %v1629_v27  ;;  %v1257_v38 = vadd.f32 %v1256_v29, %v1255_v8  ;;  %v1314_v30 = vrot.slane %v1313_v24, 1  ;;  %v1189_v8 = vmul.f32 1.442695, %v1150_v4 }
 0x232   : > { %v1068_v33 = vmax.f32 %v1066_v10, %v1067_v17  ;;  %v1065_v27 = vmax.f32 %v1063_v1, %v1064_v23  ;;  %v1118_v51 = vrot.slane %v1117_v7, 2  ;;  %v1219_v29 = vmul.f32 1.442695, %v1165_v55 }
 0x233   : > { %v1632_v28 = vrot.slane %v1631_v12, 1  ;;  %v1315_v57 = vadd.f32 %v1314_v30, %v1313_v24  ;;  %v1258_v13 = vrot.slane %v1257_v38, 1  ;;  %v1166_v24 = vsub.f32 %v3425_v3, %v1114_v5 }
 0x234   : > { %v1069_v59 = vrot.slane %v1068_v33, 2  ;;  %v1151_v43 = vsub.f32 %v3456_v16, %v1065_v27  ;;  %v1152_v6 = vsub.f32 %v3443_v45, %v1065_v27  ;;  %v1119_v16 = vmax.f32 %v1117_v7, %v1118_v51 }
 0x235   : > { %v1633_v31 = vadd.f32 %v1632_v28, %v1631_v12  ;;  %2067 = vrcp.f32 %v1315_v57  ;;  %v1259_v36 = vadd.f32 %v1258_v13, %v1257_v38  ;;  %v3481_v58 = vpop.xlane.xlu0 %1021  ;;  %v1221_v28 = vmul.f32 1.442695, %v1166_v24 }
 0x236   : > { %v1070_v22 = vmax.f32 %v1068_v33, %v1069_v59  ;;  %v1193_v30 = vmul.f32 1.442695, %v1152_v6  ;;  %v1122_v3 = vmax.f32 %v3489_v18, %v3481_v58  ;;  %v1120_v5 = vrot.slane %v1119_v16, 1 }
 0x237   : > { %v3472_v2 = vsel %vm1692_vm1, %v1633_v31, %v1626_v35  ;;  %2069 = vrcp.f32 %v1259_v36 }
 0x238   : > { %v1071_v52 = vrot.slane %v1070_v22, 1  ;;  %2071 = vpow2.f32 %v1187_v47  ;;  %v1123_v33 = vrot.slane %v1122_v3, 4 }
 0x239   : > { %2073 = vpow2.f32 %v1189_v8 }
 0x23a   : > { %v1072_v12 = vmax.f32 %v1070_v22, %v1071_v52  ;;  %v1124_v42 = vmax.f32 %v1122_v3, %v1123_v33 }
 0x23b   : > { %v2068_v11 = vpop.eup %2067 }
 0x23c   : > { %v1387_v60 = vmul.f32 %v2068_v11, %v3435_v49  ;;  %v1388_v50 = vmul.f32 %v2068_v11, %v3441_v37  ;;  %v1191_v37 = vmul.f32 1.442695, %v1151_v43  ;;  %v1153_v54 = vsub.f32 %v3462_v14, %v1072_v12  ;;  %v3505_v14 = vpop.f32.mrf.mxu1 }
 0x23d   : > { %v2070_v19 = vpop.eup %2069  ;;  %v1154_v26 = vsub.f32 %v3460_v32, %v1072_v12  ;;  %v3501_v36 = vpop.xlane.xlu0 %1023  ;;  %v1121_v32 = vmax.f32 %v1119_v16, %v1120_v5 }
 0x23e   : > { %v1552_v0 = vmul.f32 %v1497_v44, %v1387_v60  ;;  %v1553_v40 = vmul.f32 %v1500_v56, %v1388_v50  ;;  %v1371_v38 = vmul.f32 %v2070_v19, %v3445_v34  ;;  %v1372_v49 = vmul.f32 %v2070_v19, %v3449_v48  ;;  %v3497_v48 = vpop.xlane.xlu1 %1025  ;;  %v3499_v13 = vpop.eup %2071 }
 0x23f   : > { %2075 = vpow2.f32 %v1191_v37  ;;  %v1195_v17 = vmul.f32 1.442695, %v1153_v54  ;;  %v1197_v31 = vmul.f32 1.442695, %v1154_v26  ;;  %v3503_v61 = vpop.eup %2073  ;;  %v1129_v1 = vmax.f32 %v3501_v36, %v3497_v48 }
 0x240   : > { %v1634_v10 = vadd.f32 %v1553_v40, %v1552_v0  ;;  %v1536_v45 = vmul.f32 %v1449_v21, %v1371_v38  ;;  %v1537_v35 = vmul.f32 %v1452_v25, %v1372_v49  ;;  %2077 = vpow2.f32 %v1193_v30  ;;  %v3515_v21 = vpop.xlane.xlu2 %993 }
 0x241   : > { %2079 = vpow2.f32 %v1219_v29  ;;  %v1167_v63 = vsub.f32 %v3439_v41, %v1121_v32  ;;  %v1168_v22 = vsub.f32 %v3467_v39, %v1121_v32  ;;  %v1130_v7 = vrot.slane %v1129_v1, 4 }
 0x242   : > { %v1635_v57 = vrot.slane %v1634_v10, 4  ;;  %v1578_v34 = vadd.f32 %v1537_v35, %v1536_v45  ;;  %2081 = vpow2.f32 %v1221_v28  ;;  %v1125_v44 = vrot.slane %v1124_v42, 2  ;;  %v3545_v45 = vpop.f32.mrf.mxu3 }
 0x243   : > { %2083 = vpow2.f32 %v1195_v17  ;;  %v1260_v25 = vadd.f32 %v3503_v61, %v3499_v13  ;;  %v1131_v8 = vmax.f32 %v1129_v1, %v1130_v7  ;;  %v1223_v51 = vmul.f32 1.442695, %v1167_v63 }
 0x244   : > { %v1636_v46 = vadd.f32 %v1635_v57, %v1634_v10  ;;  %v1579_v15 = vrot.slane %v1578_v34, 4  ;;  %2085 = vpow2.f32 %v1197_v31  ;;  %v1126_v39 = vmax.f32 %v1124_v42, %v1125_v44  ;;  %v3535_v49 = vpop.f32.mrf.mxu1 }
 0x245   : > { %v3509_v59 = vpop.eup %2075  ;;  %v1225_v6 = vmul.f32 1.442695, %v1168_v22  ;;  %v1132_v29 = vrot.slane %v1131_v8, 2  ;;  %v1261_v40 = vrot.slane %v1260_v25, 4  ;;  %v1073_v38 = vmax.f32 %v3475_v20, %v3515_v21  ;;  %v3553_v33 = vpop.xlane.xlu0 %997 }
 0x246   : > { %v1637_v62 = vrot.slane %v1636_v46, 2  ;;  %v1580_v4 = vadd.f32 %v1579_v15, %v1578_v34  ;;  %v3512_v23 = vpop.eup %2077  ;;  %v1127_v24 = vrot.slane %v1126_v39, 1  ;;  %2087 = vpow2.f32 %v1223_v51 }
 0x247   : > { %v3517_v56 = vpop.eup %2079  ;;  %v1267_v52 = vadd.f32 %v3512_v23, %v3509_v59  ;;  %2089 = vpow2.f32 %v1225_v6  ;;  %v1133_v35 = vmax.f32 %v1131_v8, %v1132_v29  ;;  %v1262_v3 = vadd.f32 %v1261_v40, %v1260_v25 }
 0x248   : > { %v1638_v55 = vadd.f32 %v1637_v62, %v1636_v46  ;;  %v1581_v47 = vrot.slane %v1580_v4, 2  ;;  %v3521_v41 = vpop.eup %2081  ;;  %v1128_v10 = vmax.f32 %v1126_v39, %v1127_v24  ;;  %v1074_v26 = vrot.slane %v1073_v38, 4  ;;  %v3549_v17 = vpop.xlane.xlu2 %995 }
 0x249   : > { %v3525_v60 = vpop.eup %2083  ;;  %v1316_v37 = vadd.f32 %v3521_v41, %v3517_v56  ;;  %v1268_v30 = vrot.slane %v1267_v52, 4  ;;  %v1134_v34 = vrot.slane %v1133_v35, 1  ;;  %v1263_v62 = vrot.slane %v1262_v3, 2 }
 0x24a   : > { %v1639_v27 = vrot.slane %v1638_v55, 1  ;;  %v1582_v11 = vadd.f32 %v1581_v47, %v1580_v4  ;;  %v3527_v19 = vpop.eup %2085  ;;  %v1169_v28 = vsub.f32 %v3489_v18, %v1128_v10  ;;  %v1170_v54 = vsub.f32 %v3481_v58, %v1128_v10  ;;  %v3565_v8 = vpop.f32.mrf.mxu3 }
 0x24b   : > { %v1317_v57 = vrot.slane %v1316_v37, 4  ;;  %v1135_v32 = vmax.f32 %v1133_v35, %v1134_v34  ;;  %v1075_v18 = vmax.f32 %v1073_v38, %v1074_v26  ;;  %v1080_v58 = vmax.f32 %v3549_v17, %v3553_v33 }
 0x24c   : > { %v1640_v50 = vadd.f32 %v1639_v27, %v1638_v55  ;;  %v1583_v43 = vrot.slane %v1582_v11, 1  ;;  %v1227_v5 = vmul.f32 1.442695, %v1169_v28  ;;  %v1229_v46 = vmul.f32 1.442695, %v1170_v54  ;;  %v3551_v15 = vpop.eup %2087  ;;  %v3559_v4 = vpop.f32.mrf.mxu1 }
 0x24d   : > { %v3555_v1 = vpop.eup %2089  ;;  %v1318_v63 = vadd.f32 %v1317_v57, %v1316_v37  ;;  %v1171_v42 = vsub.f32 %v3501_v36, %v1135_v32  ;;  %v1172_v7 = vsub.f32 %v3497_v48, %v1135_v32  ;;  %v1264_v27 = vadd.f32 %v1263_v62, %v1262_v3  ;;  %v3575_v37 = vpop.xlane.xlu1 %1027 }
 0x24e   : > { %v3531_v12 = vsel %vm1694_vm2, %v1640_v50, %v3472_v2  ;;  %v1584_v0 = vadd.f32 %v1583_v43, %v1582_v11  ;;  %v1274_v2 = vadd.f32 %v3527_v19, %v3525_v60  ;;  %2091 = vpow2.f32 %v1227_v5 }
 0x24f   : > { %2093 = vpow2.f32 %v1229_v46  ;;  %v1323_v22 = vadd.f32 %v3555_v1, %v3551_v15  ;;  %v1231_v44 = vmul.f32 1.442695, %v1171_v42  ;;  %v1076_v11 = vrot.slane %v1075_v18, 2 }
 0x250   : > { %v3541_v16 = vsel %vm1694_vm2, %v1584_v0, %v3452_v53  ;;  %v1269_v53 = vadd.f32 %v1268_v30, %v1267_v52  ;;  %v1275_v31 = vrot.slane %v1274_v2, 4  ;;  %v1081_v25 = vrot.slane %v1080_v58, 4  ;;  %v3569_v29 = vpop.xlane.xlu2 %1029 }
 0x251   : > { %v1319_v52 = vrot.slane %v1318_v63, 2  ;;  %v1233_v51 = vmul.f32 1.442695, %v1172_v7  ;;  %2095 = vpow2.f32 %v1231_v44  ;;  %v1077_v43 = vmax.f32 %v1075_v18, %v1076_v11 }
 0x252   : > { %v1270_v55 = vrot.slane %v1269_v53, 2  ;;  %v1276_v47 = vadd.f32 %v1275_v31, %v1274_v2  ;;  %v1324_v6 = vrot.slane %v1323_v22, 4  ;;  %v1082_v24 = vmax.f32 %v1080_v58, %v1081_v25  ;;  %v3585_v46 = vpop.f32.mrf.mxu3  ;;  %v1454_v25 = vpop.f32.mrf.mxu0 }
 0x253   : > { %2097 = vpow2.f32 %v1233_v51  ;;  %v1265_v0 = vrot.slane %v1264_v27, 1  ;;  %v1078_v38 = vrot.slane %v1077_v43, 1  ;;  %v1320_v2 = vadd.f32 %v1319_v52, %v1318_v63 }
 0x254   : > { %v3567_v39 = vpop.eup %2091  ;;  %v1271_v50 = vadd.f32 %v1270_v55, %v1269_v53  ;;  %v1277_v36 = vrot.slane %v1276_v47, 2  ;;  %v1083_v30 = vrot.slane %v1082_v24, 2  ;;  %v1136_v3 = vmax.f32 %v3575_v37, %v3569_v29  ;;  %v3579_v28 = vpop.f32.mrf.mxu1 }
 0x255   : > { %v3571_v48 = vpop.eup %2093  ;;  %v1325_v54 = vadd.f32 %v1324_v6, %v1323_v22  ;;  %v1079_v57 = vmax.f32 %v1077_v43, %v1078_v38  ;;  %v1266_v31 = vadd.f32 %v1265_v0, %v1264_v27  ;;  %v1321_v63 = vrot.slane %v1320_v2, 1 }
 0x256   : > { %v1330_v40 = vadd.f32 %v3571_v48, %v3567_v39  ;;  %v1272_v10 = vrot.slane %v1271_v50, 1  ;;  %v1278_v35 = vadd.f32 %v1277_v36, %v1276_v47  ;;  %v1084_v34 = vmax.f32 %v1082_v24, %v1083_v30 }
 0x257   : > { %v3581_v53 = vpop.eup %2095  ;;  %v1155_v62 = vsub.f32 %v3475_v20, %v1079_v57  ;;  %v1156_v18 = vsub.f32 %v3515_v21, %v1079_v57  ;;  %v1137_v47 = vrot.slane %v1136_v3, 4  ;;  %v1326_v22 = vrot.slane %v1325_v54, 2 }
 0x258   : > { %v1331_v26 = vrot.slane %v1330_v40, 4  ;;  %v1085_v58 = vrot.slane %v1084_v34, 1  ;;  %v1273_v42 = vadd.f32 %v1272_v10, %v1271_v50  ;;  %v1279_v55 = vrot.slane %v1278_v35, 1 }
 0x259   : > { %v3583_v5 = vpop.eup %2097  ;;  %v1199_v44 = vmul.f32 1.442695, %v1155_v62  ;;  %v1201_v27 = vmul.f32 1.442695, %v1156_v18  ;;  %2099 = vrcp.f32 %v1266_v31  ;;  %v1322_v20 = vadd.f32 %v1321_v63, %v1320_v2 }
 0x25a   : > { %v1332_v32 = vadd.f32 %v1331_v26, %v1330_v40  ;;  %v1337_v7 = vadd.f32 %v3583_v5, %v3581_v53  ;;  %v1086_v11 = vmax.f32 %v1084_v34, %v1085_v58  ;;  %v1138_v21 = vmax.f32 %v1136_v3, %v1137_v47  ;;  %v3597_v2 = vpop.f32.mrf.mxu3 }
 0x25b   : > { %2101 = vpow2.f32 %v1199_v44  ;;  %v1280_v36 = vadd.f32 %v1279_v55, %v1278_v35  ;;  %v1327_v43 = vadd.f32 %v1326_v22, %v1325_v54  ;;  %v1455_v55 = vadd.f32 %v3395_v9, %v1454_v25 }
 0x25c   : > { %v1333_v52 = vrot.slane %v1332_v32, 2  ;;  %v1338_v51 = vrot.slane %v1337_v7, 4  ;;  %2103 = vrcp.f32 %v1273_v42  ;;  %v1157_v6 = vsub.f32 %v3549_v17, %v1086_v11  ;;  %v3592_v24 = vpop.f32.mrf.mxu1  ;;  %v1502_v42 = vpop.f32.mrf.mxu2 }
 0x25d   : > { %2105 = vpow2.f32 %v1201_v27  ;;  %v1158_v38 = vsub.f32 %v3553_v33, %v1086_v11  ;;  %v1139_v26 = vrot.slane %v1138_v21, 2  ;;  %v1328_v35 = vrot.slane %v1327_v43, 1 }
 0x25e   : > { %v1339_v50 = vadd.f32 %v1338_v51, %v1337_v7  ;;  %v1334_v0 = vadd.f32 %v1333_v52, %v1332_v32  ;;  %2107 = vrcp.f32 %v1322_v20  ;;  %v1203_v10 = vmul.f32 1.442695, %v1157_v6  ;;  %v1457_v32 = vpop.f32.mrf.mxu0 }
 0x25f   : > { %v2100_v30 = vpop.eup %2099  ;;  %2109 = vrcp.f32 %v1280_v36  ;;  %v1205_v3 = vmul.f32 1.442695, %v1158_v38  ;;  %v1140_v17 = vmax.f32 %v1138_v21, %v1139_v26  ;;  %v1329_v7 = vadd.f32 %v1328_v35, %v1327_v43 }
 0x260   : > { %v1340_v40 = vrot.slane %v1339_v50, 2  ;;  %2111 = vpow2.f32 %v1203_v10  ;;  %v1335_v62 = vrot.slane %v1334_v0, 1  ;;  %v1373_v33 = vmul.f32 %v2100_v30, %v3499_v13 }
 0x261   : > { %v3595_v57 = vpop.eup %2101  ;;  %2113 = vpow2.f32 %v1205_v3  ;;  %v1374_v18 = vmul.f32 %v2100_v30, %v3503_v61  ;;  %v1141_v63 = vrot.slane %v1140_v17, 1  ;;  %v1458_v27 = vadd.f32 %v3395_v9, %v1457_v32 }
 0x262   : > { %v2104_v54 = vpop.eup %2103  ;;  %v1341_v34 = vadd.f32 %v1340_v40, %v1339_v50  ;;  %v1461_v61 = vadd.f32 %v3395_v9, %v3505_v14  ;;  %v1464_v20 = vadd.f32 %v3395_v9, %v3535_v49  ;;  %v1336_v25 = vadd.f32 %v1335_v62, %v1334_v0  ;;  %v1520_v26 = vpop.f32.mrf.mxu3 }
 0x263   : > { %v3599_v31 = vpop.eup %2105  ;;  %v1375_v47 = vmul.f32 %v2104_v54, %v3509_v59  ;;  %v1376_v22 = vmul.f32 %v2104_v54, %v3512_v23  ;;  %v1142_v13 = vmax.f32 %v1140_v17, %v1141_v63  ;;  %v1538_v23 = vmul.f32 %v1455_v55, %v1373_v33 }
 0x264   : > { %v1281_v58 = vadd.f32 %v3599_v31, %v3595_v57  ;;  %v2108_v44 = vpop.eup %2107  ;;  %v1342_v11 = vrot.slane %v1341_v34, 1  ;;  %v3613_v21 = vpop.f32.mrf.mxu1  ;;  %v1539_v36 = vmul.f32 %v1458_v27, %v1374_v18  ;;  %2115 = vrcp.f32 %v1329_v7 }
 0x265   : > { %v2110_v51 = vpop.eup %2109  ;;  %v1173_v50 = vsub.f32 %v3575_v37, %v1142_v13  ;;  %v1540_v40 = vmul.f32 %v1461_v61, %v1375_v47  ;;  %v1541_v38 = vmul.f32 %v1464_v20, %v1376_v22  ;;  %v1174_v14 = vsub.f32 %v3569_v29, %v1142_v13  ;;  %v1505_v33 = vpop.f32.mrf.mxu2 }
 0x266   : > { %v1282_v52 = vrot.slane %v1281_v58, 4  ;;  %v3615_v59 = vpop.eup %2111  ;;  %v1377_v30 = vmul.f32 %v2110_v51, %v3525_v60  ;;  %v1343_v49 = vadd.f32 %v1342_v11, %v1341_v34  ;;  %v1378_v35 = vmul.f32 %v2110_v51, %v3527_v19 }
 0x267   : > { %v3618_v6 = vpop.eup %2113  ;;  %2117 = vrcp.f32 %v1336_v25  ;;  %v1235_v3 = vmul.f32 1.442695, %v1173_v50  ;;  %v1237_v37 = vmul.f32 1.442695, %v1174_v14  ;;  %v1467_v54 = vadd.f32 %v3395_v9, %v3559_v4 }
 0x268   : > { %v1283_v43 = vadd.f32 %v1282_v52, %v1281_v58  ;;  %v1288_v0 = vadd.f32 %v3618_v6, %v3615_v59  ;;  %v1470_v17 = vadd.f32 %v3395_v9, %v3579_v28  ;;  %v1503_v60 = vadd.f32 %v3395_v9, %v1502_v42 }
 0x269   : > { %v1389_v34 = vmul.f32 %v2108_v44, %v3517_v56  ;;  %v1390_v62 = vmul.f32 %v2108_v44, %v3521_v41  ;;  %2119 = vpow2.f32 %v1235_v3  ;;  %v1592_v19 = vadd.f32 %v1541_v38, %v1540_v40 }
 0x26a   : > { %v1284_v10 = vrot.slane %v1283_v43, 2  ;;  %v1289_v32 = vrot.slane %v1288_v0, 4  ;;  %v1585_v18 = vadd.f32 %v1539_v36, %v1538_v23  ;;  %2121 = vrcp.f32 %v1343_v49  ;;  %v2116_v63 = vpop.eup %2115  ;;  %v1523_v61 = vpop.f32.mrf.mxu3 }
 0x26b   : > { %v1542_v55 = vmul.f32 %v1467_v54, %v1377_v30  ;;  %v1543_v4 = vmul.f32 %v1470_v17, %v1378_v35  ;;  %2123 = vpow2.f32 %v1237_v37  ;;  %v1506_v28 = vadd.f32 %v3395_v9, %v1505_v33 }
 0x26c   : > { %v1285_v29 = vadd.f32 %v1284_v10, %v1283_v43  ;;  %v1290_v47 = vadd.f32 %v1289_v32, %v1288_v0  ;;  %v1509_v56 = vadd.f32 %v3395_v9, %v3545_v45  ;;  %v1512_v41 = vadd.f32 %v3395_v9, %v3565_v8  ;;  %v1478_v42 = vpop.f32.mrf.mxu1  ;;  %v3644_v9 = vld [vmem:[%s3723_s3] ss:$0 sm:$0xff] }
 0x26d   : > { %v2118_v7 = vpop.eup %2117  ;;  %v1554_v44 = vmul.f32 %v1503_v60, %v1389_v34  ;;  %v1555_v11 = vmul.f32 %v1506_v28, %v1390_v62  ;;  %v1593_v52 = vrot.slane %v1592_v19, 4  ;;  %v1586_v13 = vrot.slane %v1585_v18, 4 }
 0x26e   : > { %v1286_v58 = vrot.slane %v1285_v29, 1  ;;  %v1291_v27 = vrot.slane %v1290_v47, 2  ;;  %v1599_v20 = vadd.f32 %v1543_v4, %v1542_v55  ;;  %v1391_v25 = vmul.f32 %v2116_v63, %v3551_v15 }
 0x26f   : > { %v3637_v51 = vpop.eup %2119  ;;  %v1392_v23 = vmul.f32 %v2116_v63, %v3555_v1  ;;  %v1515_v8 = vadd.f32 %v3644_v9, %v3585_v46  ;;  %v1518_v43 = vadd.f32 %v3644_v9, %v3597_v2  ;;  %v1521_v50 = vadd.f32 %v3644_v9, %v1520_v26 }
 0x270   : > { %v1287_v22 = vadd.f32 %v1286_v58, %v1285_v29  ;;  %v1292_v36 = vadd.f32 %v1291_v27, %v1290_v47  ;;  %v2122_v45 = vpop.eup %2121  ;;  %v1393_v40 = vmul.f32 %v2118_v7, %v3567_v39  ;;  %v1473_v1 = vadd.f32 %v3644_v9, %v3592_v24 }
 0x271   : > { %v3652_v15 = vpop.eup %2123  ;;  %v1476_v38 = vadd.f32 %v3644_v9, %v3613_v21  ;;  %v1394_v14 = vmul.f32 %v2118_v7, %v3571_v48  ;;  %v1641_v49 = vadd.f32 %v1555_v11, %v1554_v44  ;;  %v1594_v46 = vadd.f32 %v1593_v52, %v1592_v19 }
 0x272   : > { %2125 = vrcp.f32 %v1287_v22  ;;  %v1293_v30 = vrot.slane %v1292_v36, 1  ;;  %v1587_v10 = vadd.f32 %v1586_v13, %v1585_v18  ;;  %v1344_v2 = vadd.f32 %v3652_v15, %v3637_v51  ;;  %v1526_v4 = vpop.f32.mrf.mxu3 }
 0x273   : > { %v1600_v0 = vrot.slane %v1599_v20, 4  ;;  %v1556_v26 = vmul.f32 %v1509_v56, %v1391_v25  ;;  %v1557_v39 = vmul.f32 %v1512_v41, %v1392_v23  ;;  %v1558_v37 = vmul.f32 %v1515_v8, %v1393_v40 }
 0x274   : > { %v1294_v35 = vadd.f32 %v1293_v30, %v1292_v36  ;;  %v1395_v24 = vmul.f32 %v2122_v45, %v3581_v53  ;;  %v1396_v54 = vmul.f32 %v2122_v45, %v3583_v5  ;;  %v1345_v21 = vrot.slane %v1344_v2, 4  ;;  %v1481_v33 = vpop.f32.mrf.mxu1 }
 0x275   : > { %v1559_v17 = vmul.f32 %v1518_v43, %v1394_v14  ;;  %v1524_v32 = vadd.f32 %v3644_v9, %v1523_v61  ;;  %v1595_v60 = vrot.slane %v1594_v46, 2  ;;  %v1588_v34 = vrot.slane %v1587_v10, 2 }
 0x276   : > { %2127 = vrcp.f32 %v1294_v35  ;;  %v1346_v62 = vadd.f32 %v1345_v21, %v1344_v2  ;;  %v1601_v19 = vadd.f32 %v1600_v0, %v1599_v20  ;;  %v1648_v18 = vadd.f32 %v1557_v39, %v1556_v26 }
 0x277   : > { %v1560_v53 = vmul.f32 %v1521_v50, %v1395_v24  ;;  %v1561_v55 = vmul.f32 %v1524_v32, %v1396_v54  ;;  %v1642_v47 = vrot.slane %v1641_v49, 4  ;;  %v1655_v28 = vadd.f32 %v1559_v17, %v1558_v37 }
 0x278   : > { %v2126_v3 = vpop.eup %2125  ;;  %v1347_v5 = vrot.slane %v1346_v62, 2  ;;  %v1482_v22 = vadd.f32 %v3644_v9, %v1481_v33  ;;  %v1589_v7 = vadd.f32 %v1588_v34, %v1587_v10  ;;  %v1596_v44 = vadd.f32 %v1595_v60, %v1594_v46 }
 0x279   : > { %v1379_v48 = vmul.f32 %v2126_v3, %v3595_v57  ;;  %v1380_v29 = vmul.f32 %v2126_v3, %v3599_v31  ;;  %v1479_v31 = vadd.f32 %v3644_v9, %v1478_v42  ;;  %v1602_v27 = vrot.slane %v1601_v19, 2 }
 0x27a   : > { %v1348_v56 = vadd.f32 %v1347_v5, %v1346_v62  ;;  %v1649_v11 = vrot.slane %v1648_v18, 4  ;;  %v1662_v13 = vadd.f32 %v1561_v55, %v1560_v53  ;;  %v1643_v23 = vadd.f32 %v1642_v47, %v1641_v49  ;;  %v1529_v26 = vpop.f32.mrf.mxu3 }
 0x27b   : > { %v1544_v58 = vmul.f32 %v1473_v1, %v1379_v48  ;;  %v1545_v63 = vmul.f32 %v1476_v38, %v1380_v29  ;;  %v1656_v36 = vrot.slane %v1655_v28, 4  ;;  %v1590_v8 = vrot.slane %v1589_v7, 1 }
 0x27c   : > { %v2128_v41 = vpop.eup %2127  ;;  %v1349_v25 = vrot.slane %v1348_v56, 1  ;;  %v1597_v40 = vrot.slane %v1596_v44, 1  ;;  %v1603_v1 = vadd.f32 %v1602_v27, %v1601_v19  ;;  %v1650_v14 = vadd.f32 %v1649_v11, %v1648_v18 }
 0x27d   : > { %v1606_v57 = vadd.f32 %v1545_v63, %v1544_v58  ;;  %v1381_v61 = vmul.f32 %v2128_v41, %v3615_v59  ;;  %v1382_v20 = vmul.f32 %v2128_v41, %v3618_v6  ;;  %v1663_v30 = vrot.slane %v1662_v13, 4 }
 0x27e   : > { %v1350_v50 = vadd.f32 %v1349_v25, %v1348_v56  ;;  %v1657_v10 = vadd.f32 %v1656_v36, %v1655_v28  ;;  %v1644_v59 = vrot.slane %v1643_v23, 2  ;;  %v1591_v0 = vadd.f32 %v1590_v8, %v1589_v7 }
 0x27f   : > { %v1607_v52 = vrot.slane %v1606_v57, 4  ;;  %v1546_v42 = vmul.f32 %v1479_v31, %v1381_v61  ;;  %v1547_v43 = vmul.f32 %v1482_v22, %v1382_v20  ;;  %v1527_v49 = vadd.f32 %v3644_v9, %v1526_v4 }
 0x280   : > { %2129 = vrcp.f32 %v1350_v50  ;;  %v1604_v39 = vrot.slane %v1603_v1, 1  ;;  %v1598_v35 = vadd.f32 %v1597_v40, %v1596_v44  ;;  %v1651_v3 = vrot.slane %v1650_v14, 2 }
 0x281   : > { %v1608_v45 = vadd.f32 %v1607_v52, %v1606_v57  ;;  %v1613_v46 = vadd.f32 %v1547_v43, %v1546_v42  ;;  %v1664_v37 = vadd.f32 %v1663_v30, %v1662_v13  ;;  %v1658_v54 = vrot.slane %v1657_v10, 2 }
 0x282   : > { %v1645_v48 = vadd.f32 %v1644_v59, %v1643_v23  ;;  %v1530_v29 = vadd.f32 %v3644_v9, %v1529_v26  ;;  %v1697_v32 = vsel %vm1696_vm3, %v1591_v0, %v3541_v16  ;;  %v1605_v34 = vadd.f32 %v1604_v39, %v1603_v1 }
 0x283   : > { %v1609_v38 = vrot.slane %v1608_v45, 2  ;;  %v1614_v6 = vrot.slane %v1613_v46, 4  ;;  %v1699_v19 = vsel %vm1698_vm4, %v1598_v35, %v1697_v32  ;;  %v1652_v18 = vadd.f32 %v1651_v3, %v1650_v14 }
 0x284   : > { %v1665_v58 = vrot.slane %v1664_v37, 2  ;;  %v1659_v53 = vadd.f32 %v1658_v54, %v1657_v10  ;;  %v1646_v16 = vrot.slane %v1645_v48, 1  ;;  %v1701_v28 = vsel %vm1700_vm5, %v1605_v34, %v1699_v19 }
 0x285   : > { %v1610_v2 = vadd.f32 %v1609_v38, %v1608_v45  ;;  %v1615_v24 = vadd.f32 %v1614_v6, %v1613_v46 }
 0x286   : > { %v2130_v17 = vpop.eup %2129  ;;  %v1660_v31 = vrot.slane %v1659_v53, 1  ;;  %v1647_v41 = vadd.f32 %v1646_v16, %v1645_v48 }
 0x287   : > { %v1611_v21 = vrot.slane %v1610_v2, 1  ;;  %v1616_v60 = vrot.slane %v1615_v24, 2  ;;  %v1397_v62 = vmul.f32 %v2130_v17, %v3637_v51  ;;  %v1398_v33 = vmul.f32 %v2130_v17, %v3652_v15 }
 0x288   : > { %v1653_v51 = vrot.slane %v1652_v18, 1  ;;  %v1666_v15 = vadd.f32 %v1665_v58, %v1664_v37  ;;  %v1661_v52 = vadd.f32 %v1660_v31, %v1659_v53  ;;  %v1708_v61 = vsel %vm1696_vm3, %v1647_v41, %v3531_v12 }
 0x289   : > { %v1617_v63 = vadd.f32 %v1616_v60, %v1615_v24  ;;  %v1612_v55 = vadd.f32 %v1611_v21, %v1610_v2  ;;  %v1562_v5 = vmul.f32 %v1527_v49, %v1397_v62  ;;  %v1563_v9 = vmul.f32 %v1530_v29, %v1398_v33 }
 0x28a   : > { %v1654_v27 = vadd.f32 %v1653_v51, %v1652_v18  ;;  %v1667_v11 = vrot.slane %v1666_v15, 1 }
 0x28b   : > { %v1618_v4 = vrot.slane %v1617_v63, 1  ;;  %v1669_v47 = vadd.f32 %v1563_v9, %v1562_v5  ;;  %v1703_v7 = vsel %vm1702_vm7, %v1612_v55, %v1701_v28 }
 0x28c   : > { %v1709_v25 = vsel %vm1698_vm4, %v1654_v27, %v1708_v61  ;;  %v1668_v23 = vadd.f32 %v1667_v11, %v1666_v15 }
 0x28d   : > { %v1619_v57 = vadd.f32 %v1618_v4, %v1617_v63  ;;  %v1670_v22 = vrot.slane %v1669_v47, 4  ;;  %v1710_v45 = vsel %vm1700_vm5, %v1661_v52, %v1709_v25 }
 0x28e   : > { %v1711_v42 = vsel %vm1702_vm7, %v1668_v23, %v1710_v45 }
 0x28f   : > { %v1705_v56 = vsel %vm1704_vm6, %v1619_v57, %v1703_v7  ;;  %v1671_v44 = vadd.f32 %v1670_v22, %v1669_v47 }
 0x290   : > { %1715 = vst [vmem:[%s249_s22] sm:$0xff] %v1705_v56 }
 0x291   : > { %v1672_v13 = vrot.slane %v1671_v44, 2 }
 0x293   : > { %v1673_v20 = vadd.f32 %v1672_v13, %v1671_v44 }
 0x295   : > { %v1674_v36 = vrot.slane %v1673_v20, 1 }
 0x297   : > { %v1675_v8 = vadd.f32 %v1674_v36, %v1673_v20 }
 0x299   : > { %v1712_v43 = vsel %vm1704_vm6, %v1675_v8, %v1711_v42 }
 0x29a   : > { %1716 = vst [vmem:[%s249_s22 + $0x8] sm:$0xff] %v1712_v43 }
 0x29b   : > { %2250 = shalt.err (!%p2247_p8)
}
 0x29c   : > { %s2300_s20 = smov 128   ;;  %s2301_s1 = smov 8  }
 0x29d   : > { %1905 = dma.vmem_to_hbm [thread:$0]  (%p2379_p11), %s1731_s19, 256, %s1733_s8, %s1718_s13, %s2300_s20, %s2300_s20, %s2301_s1  }
 0x29e PF: > { %s1747_s2 = sand.u32 1, %s2281_s15   ;;  %p3752_p9 = scmp.ge.s32.totalorder %s2293_s18, 2 }
 0x29f   : > { %s1748_s24 = scalar_lea.sflag [#allocation4], %s1747_s2 }
 0x2a0   : > { %p1919_p10 = pnand %p3752_p9, %p2383_p12 }
 0x2a2   : > { %p1920_p1 = pneg %p1919_p10 }
 0x2a4   : > { %2276 = dma.done.wait (%p1920_p1), %s1748_s24, 256  }
 0x2a5   : > { %2278 = vsyncadd (%p1920_p1), %s1748_s24, 4294967040  ;;  %s3753_s26 = sld [smem:[#allocation12_spill]]  ;;  %p18_p2 = scmp.ge.s32.totalorder %s2352_s21, 4  }
 0x2a6   : > { %s3754_s15 = smov %s2285_s16  ;;  %s3755_s16 = smov %s2289_s17 }
 0x2a7   : > { %s3757_s18 = smov %s2352_s21  ;;  %20 = sbr.rel (!%p18_p2) target bundleno = 9 (0x9), region = 89 }
 0x2ab   : > { %s3756_s17 = smov %s3753_s26 }
 0x2ac   :  { %1754 = vsyncpa [#allocation3], 1 }
 0x2ad   :  { %1756 = vsyncpa [#allocation3 + $0x1], 1 }
 0x2ae   :  { %1757 = vsyncpa [#allocation6], 1 }
 0x2af   :  { %1758 = vsyncpa [#allocation4], 1 }
 0x2b0   :  { %1760 = vsyncpa [#allocation4 + $0x1], 1 }

</bundles_post_ra>
